<compile_context>
chip_gen: v7x
topology: tpu7x:2x2x1
jax: 0.10.0
libtpu: 0.0.40
codegen_flags: <defaults>
</compile_context>

<pallas_src>
import jax
import jax.numpy as jnp
import numpy as np
from jax.experimental import pallas as pl
from jax.experimental.pallas import tpu as pltpu


LAYER_CFG = [
    dict(c_in=2,  c_out=32,  kh=2, kw=5, stride=2, pad_w=1),   # conv_1
    dict(c_in=32, c_out=32,  kh=2, kw=3, stride=2, pad_w=1),   # conv_2
    dict(c_in=32, c_out=32,  kh=2, kw=3, stride=1, pad_w=1),   # conv_3
    dict(c_in=32, c_out=64,  kh=2, kw=3, stride=1, pad_w=1),   # conv_4
    dict(c_in=64, c_out=128, kh=2, kw=3, stride=1, pad_w=1),   # conv_5
]
BN_EPS = 1e-8                    # nn.BatchNorm2d(..., eps=1e-08) in the module
MATMUL_DTYPE = jnp.bfloat16      # MXU input dtype; accumulation stays float32
LANE = 128
SUBLANE = 8


def _round_up(n, m):
    return ((n + m - 1) // m) * m


def layer_geometry(f_in0):
    """Static per-layer geometry for the flattened (freq * channel) lane layout."""
    geo = []
    f_in = f_in0
    k_in = _round_up(f_in0 * LAYER_CFG[0]["c_in"], LANE)   # padded input lane width
    for cfg in LAYER_CFG:
        f_out = (f_in + 2 * cfg["pad_w"] - cfg["kw"]) // cfg["stride"] + 1
        n_raw = f_out * cfg["c_out"]
        n_pad = _round_up(n_raw, LANE)       # lane-dense (128-multiple) output width
        geo.append(dict(f_in=f_in, f_out=f_out, k_in=k_in, n_raw=n_raw, n_pad=n_pad))
        f_in, k_in = f_out, n_pad            # this output feeds the next layer as-is
    return geo


def init_params(key):
    """Deterministic synthetic parameters with the shapes implied by __init__."""
    params = []
    for cfg in LAYER_CFG:
        key, *ks = jax.random.split(key, 8)
        c_in, c_out, kh, kw = cfg["c_in"], cfg["c_out"], cfg["kh"], cfg["kw"]
        w = 0.05 * jax.random.normal(ks[0], (c_out, c_in, kh, kw), jnp.float32)
        b = 0.05 * jax.random.normal(ks[1], (c_out,), jnp.float32)
        gamma = 1.0 + 0.1 * jax.random.normal(ks[2], (c_out,), jnp.float32)
        beta = 0.1 * jax.random.normal(ks[3], (c_out,), jnp.float32)
        mean = 0.1 * jax.random.normal(ks[4], (c_out,), jnp.float32)
        var = 0.5 + jax.random.uniform(ks[5], (c_out,), jnp.float32)
        alpha = jnp.full((c_out,), 0.25, jnp.float32)   # nn.PReLU(c_out) default init
        params.append((w, b, gamma, beta, mean, var, alpha))
    return params


def prepare_params(raw_params, f_in0, eps=BN_EPS):
    """Init-time (hoisted) preprocessing.

    Each Conv2d is folded into one dense per-time-tap matrix mapping the
    previous layer's (lane-padded) output lanes to this layer's lane-padded
    output lanes; the conv's frequency taps/stride/zero-padding and the
    eval-mode BatchNorm scale are baked into the matrix (fold in f32, single
    bf16 cast).  The two causal time taps are stacked along K so the kernel
    issues a single matmul per layer against [x_t ; x_{t-1}].  Conv bias + BN
    shift and the PReLU slope become per-output-lane vectors; pad lanes get
    zero weights / shift / alpha so the kernel emits the padding for free.
    """
    geo = layer_geometry(f_in0)
    prepared = []
    for cfg, g, (w, b, gamma, beta, mean, var, alpha) in zip(LAYER_CFG, geo, raw_params):
        # The batch*time row fold assumes exactly two causal time taps
        # (kernel height 2, time stride 1, causal pad of one row).
        assert cfg["kh"] == 2, "row-fold requires kh == 2"
        c_in, c_out = cfg["c_in"], cfg["c_out"]
        kw, stride, pad_w = cfg["kw"], cfg["stride"], cfg["pad_w"]
        w_np = np.asarray(w, np.float32)                      # (c_out, c_in, kh, kw)

        scale_c = np.asarray(gamma, np.float32) / np.sqrt(np.asarray(var, np.float32) + eps)
        shift_c = ((np.asarray(b, np.float32) - np.asarray(mean, np.float32)) * scale_c
                   + np.asarray(beta, np.float32))
        alpha_c = np.asarray(alpha, np.float32)

        # Dense per-tap matrices (k_in -> n_pad).  Out-of-range frequency taps
        # (the conv's zero padding) are simply dropped; lane padding stays zero.
        taps = np.zeros((2, g["k_in"], g["n_pad"]), np.float32)
        for fo in range(g["f_out"]):
            col = fo * c_out
            for iw in range(kw):
                fi = fo * stride + iw - pad_w                 # unpadded input freq index
                if 0 <= fi < g["f_in"]:
                    row = fi * c_in
                    for ih in range(2):
                        taps[ih, row:row + c_in, col:col + c_out] += (
                            w_np[:, :, ih, iw].T * scale_c[None, :])

        # x_cat = [x_t ; x_{t-1}] along lanes  ->  w_cat = [tap(ih=1) ; tap(ih=0)] along K.
        w_cat = jnp.asarray(np.concatenate([taps[1], taps[0]], axis=0), MATMUL_DTYPE)

        def lanes(vec_c):
            out = np.zeros((1, g["n_pad"]), np.float32)
            out[0, :g["n_raw"]] = np.tile(vec_c, g["f_out"])
            return jnp.asarray(out)

        prepared.append((w_cat, lanes(shift_c), lanes(alpha_c)))
    return prepared, geo


def _make_encoder_kernel(n_layers):
    def kernel(x_ref, mask_ref, *refs):
        params = refs[:3 * n_layers]
        outs = refs[3 * n_layers:]
        mask = mask_ref[...]                      # (M_pad, 1) f32; 0 on causal-pad rows
        cur = x_ref[...]                          # (M_pad, K0) f32, aligned full load
        for layer in range(n_layers):
            w_cat, shift, alpha = params[3 * layer:3 * layer + 3]
            # Previous-time tap: sublane roll (XLU) + row mask (VPU).  The mask
            # zeroes rows whose previous time step is the causal zero pad, so the
            # folded batch*time axis never mixes batches.
            prev = pltpu.roll(cur, shift=1, axis=0) * mask
            # Fuse the two causal taps into one lane-dense bf16 MXU matmul.
            x_cat = jnp.concatenate(
                [cur.astype(MATMUL_DTYPE), prev.astype(MATMUL_DTYPE)], axis=-1)
            acc = jnp.dot(x_cat, w_cat[...], preferred_element_type=jnp.float32)
            # Conv bias + inference BatchNorm folded into (weights, shift); PReLU.
            y = acc + shift[...]
            y = jnp.where(y > 0.0, y, alpha[...] * y)
            outs[layer][...] = y                  # unmasked, aligned full-tile store
            cur = y                               # vreg-carried to the next layer
    return kernel


def encoder_forward(x, prepared, geo):
    """x: (B, F, T, 2)  ->  [x_1, ..., x_5] in NCHW, matching the PyTorch module."""
    batch, f0, t, c0 = x.shape
    assert c0 == LAYER_CFG[0]["c_in"] and f0 == geo[0]["f_in"]
    m = batch * t
    m_pad = _round_up(m, SUBLANE)
    k0 = geo[0]["k_in"]

    # Input glue: rows = (batch, time), lanes = (freq, chan); pad rows to a
    # sublane multiple and lanes to 128 (layer-1 weights have matching zero rows).
    h = jnp.transpose(x, (0, 2, 1, 3)).astype(jnp.float32).reshape(m, f0 * c0)
    h = jnp.pad(h, ((0, m_pad - m), (0, k0 - f0 * c0)))

    # Per-row mask for the previous-time tap: zero where the time index is 0
    # (causal pad) and on alignment padding rows.
    mask_np = np.ones((m_pad, 1), np.float32)
    mask_np[::t] = 0.0
    mask_np[m:] = 0.0
    mask = jnp.asarray(mask_np)

    out_shape = tuple(
        jax.ShapeDtypeStruct((m_pad, g["n_pad"]), jnp.float32) for g in geo)
    flat_params = [p for layer_params in prepared for p in layer_params]

    # Single fused pallas_call: no grid, every operand is a whole-array VMEM
    # block; the five layers run back-to-back with VMEM/vreg-resident activations.
    outs = pl.pallas_call(
        _make_encoder_kernel(len(LAYER_CFG)),
        out_shape=out_shape,
    )(h, mask, *flat_params)

    # Output glue: drop pad rows/lanes and return NCHW like the module.
    results = []
    for cfg, g, o in zip(LAYER_CFG, geo, outs):
        o = o[:m, :g["n_raw"]].reshape(batch, t, g["f_out"], cfg["c_out"])
        results.append(jnp.transpose(o, (0, 3, 1, 2)))      # (B, C, T, F)
    return results


def encoder_reference(x, raw_params, eps=BN_EPS):
    """Pure-XLA f32 port of the PyTorch forward, used only for validation."""
    h = jnp.transpose(x, (0, 3, 2, 1)).astype(jnp.float32)       # NCHW (B, 2, T, F)
    outs = []
    for cfg, (w, b, gamma, beta, mean, var, alpha) in zip(LAYER_CFG, raw_params):
        h = jnp.pad(h, ((0, 0), (0, 0), (1, 0), (0, 0)))         # causal time pad
        h = jax.lax.conv_general_dilated(
            h, w, window_strides=(1, cfg["stride"]),
            padding=((0, 0), (cfg["pad_w"], cfg["pad_w"])),
            dimension_numbers=("NCHW", "OIHW", "NCHW"),
            precision=jax.lax.Precision.HIGHEST)
        h = h + b.reshape(1, -1, 1, 1)
        scale = gamma.reshape(1, -1, 1, 1) / jnp.sqrt(var.reshape(1, -1, 1, 1) + eps)
        h = (h - mean.reshape(1, -1, 1, 1)) * scale + beta.reshape(1, -1, 1, 1)
        h = jnp.where(h > 0, h, alpha.reshape(1, -1, 1, 1) * h)
        outs.append(h)
    return outs


if __name__ == "__main__":
    key = jax.random.PRNGKey(0)
    k_x, k_p = jax.random.split(key)
    B, F, T = 2, 16, 8
    x = jax.random.normal(k_x, (B, F, T, 2), jnp.float32)

    raw_params = init_params(k_p)
    prepared, geo = prepare_params(raw_params, f_in0=F)   # hoisted out of the jit

    fwd = jax.jit(lambda xx: encoder_forward(xx, prepared, geo))
    outs = jax.block_until_ready(fwd(x))

    expected = [(B, 32, T, 7), (B, 32, T, 4), (B, 32, T, 4),
                (B, 64, T, 4), (B, 128, T, 4)]
    refs = jax.jit(lambda xx: encoder_reference(xx, raw_params))(x)
    for o, e, r in zip(outs, expected, refs):
        assert o.shape == e, (o.shape, e)
        assert o.dtype == jnp.float32
        assert bool(jnp.all(jnp.isfinite(o)))
        # bf16 matmul inputs (f32 accumulation) -> loose tolerance vs f32 reference.
        err_ok = jnp.all(jnp.abs(o - r) <= 5e-2 + 5e-2 * jnp.abs(r))
        assert bool(err_ok), float(jnp.max(jnp.abs(o - r)))
    print("KERNEL_OK")
</pallas_src>

<mosaic_0001>
module attributes {stable_mosaic.version = 11 : i64} {
  func.func @kernel(%arg0: memref<16x128xf32, #tpu.memory_space<vmem>>, %arg1: memref<16x1xf32, #tpu.memory_space<vmem>>, %arg2: memref<256x256xbf16, #tpu.memory_space<vmem>>, %arg3: memref<1x256xf32, #tpu.memory_space<vmem>>, %arg4: memref<1x256xf32, #tpu.memory_space<vmem>>, %arg5: memref<512x128xbf16, #tpu.memory_space<vmem>>, %arg6: memref<1x128xf32, #tpu.memory_space<vmem>>, %arg7: memref<1x128xf32, #tpu.memory_space<vmem>>, %arg8: memref<256x128xbf16, #tpu.memory_space<vmem>>, %arg9: memref<1x128xf32, #tpu.memory_space<vmem>>, %arg10: memref<1x128xf32, #tpu.memory_space<vmem>>, %arg11: memref<256x256xbf16, #tpu.memory_space<vmem>>, %arg12: memref<1x256xf32, #tpu.memory_space<vmem>>, %arg13: memref<1x256xf32, #tpu.memory_space<vmem>>, %arg14: memref<512x512xbf16, #tpu.memory_space<vmem>>, %arg15: memref<1x512xf32, #tpu.memory_space<vmem>>, %arg16: memref<1x512xf32, #tpu.memory_space<vmem>>, %arg17: memref<16x256xf32, #tpu.memory_space<vmem>>, %arg18: memref<16x128xf32, #tpu.memory_space<vmem>>, %arg19: memref<16x128xf32, #tpu.memory_space<vmem>>, %arg20: memref<16x256xf32, #tpu.memory_space<vmem>>, %arg21: memref<16x512xf32, #tpu.memory_space<vmem>>) attributes {dimension_semantics = [], scalar_prefetch = 0 : i64, scratch_operands = 0 : i64, tpu.core_type = #tpu.core_type<tc>} {
    %c0 = arith.constant 0 : index
    %c0_0 = arith.constant 0 : index
    %0 = vector.load %arg1[%c0, %c0_0] : memref<16x1xf32, #tpu.memory_space<vmem>>, vector<16x1xf32>
    %c0_1 = arith.constant 0 : index
    %c0_2 = arith.constant 0 : index
    %1 = vector.load %arg0[%c0_1, %c0_2] : memref<16x128xf32, #tpu.memory_space<vmem>>, vector<16x128xf32>
    %c1_i32 = arith.constant 1 : i32
    %2 = tpu.dynamic_rotate %1 by %c1_i32 dim 0 : vector<16x128xf32>, i32 -> vector<16x128xf32>
    %3 = vector.broadcast %0 : vector<16x1xf32> to vector<16x128xf32>
    %4 = arith.mulf %2, %3 : vector<16x128xf32>
    %5 = arith.truncf %1 : vector<16x128xf32> to vector<16x128xbf16>
    %6 = arith.truncf %4 : vector<16x128xf32> to vector<16x128xbf16>
    %7 = tpu.concatenate %5, %6 in 1 : vector<16x128xbf16>, vector<16x128xbf16> -> vector<16x256xbf16>
    %c0_3 = arith.constant 0 : index
    %c0_4 = arith.constant 0 : index
    %8 = vector.load %arg2[%c0_3, %c0_4] : memref<256x256xbf16, #tpu.memory_space<vmem>>, vector<256x256xbf16>
    %cst = arith.constant dense<0.000000e+00> : vector<16x256xf32>
    %9 = tpu.matmul %7, %8, %cst {dimension_numbers = #tpu.dot_dimension_numbers<[1], [0], [0], [1], [0, 0, 1, 1], [], []>} : vector<16x256xbf16>, vector<256x256xbf16>, vector<16x256xf32> -> vector<16x256xf32>
    %c0_5 = arith.constant 0 : index
    %c0_6 = arith.constant 0 : index
    %10 = vector.load %arg3[%c0_5, %c0_6] : memref<1x256xf32, #tpu.memory_space<vmem>>, vector<1x256xf32>
    %11 = vector.broadcast %10 : vector<1x256xf32> to vector<16x256xf32>
    %12 = arith.addf %9, %11 : vector<16x256xf32>
    %cst_7 = arith.constant 0.000000e+00 : f32
    %13 = vector.broadcast %cst_7 : f32 to vector<16x256xf32>
    %14 = arith.cmpf ogt, %12, %13 : vector<16x256xf32>
    %c0_8 = arith.constant 0 : index
    %c0_9 = arith.constant 0 : index
    %15 = vector.load %arg4[%c0_8, %c0_9] : memref<1x256xf32, #tpu.memory_space<vmem>>, vector<1x256xf32>
    %16 = vector.broadcast %15 : vector<1x256xf32> to vector<16x256xf32>
    %17 = arith.mulf %16, %12 : vector<16x256xf32>
    %18 = arith.select %14, %12, %17 : vector<16x256xi1>, vector<16x256xf32>
    %c0_10 = arith.constant 0 : index
    %c0_11 = arith.constant 0 : index
    %19 = vector.load %arg17[%c0_10, %c0_11] : memref<16x256xf32, #tpu.memory_space<vmem>>, vector<16x256xf32>
    tpu.vector_store %arg17[%c0_10, %c0_11], %18 {strides = array<i32>} : memref<16x256xf32, #tpu.memory_space<vmem>>, vector<16x256xf32>,
    %c1_i32_12 = arith.constant 1 : i32
    %20 = tpu.dynamic_rotate %18 by %c1_i32_12 dim 0 : vector<16x256xf32>, i32 -> vector<16x256xf32>
    %21 = vector.broadcast %0 : vector<16x1xf32> to vector<16x256xf32>
    %22 = arith.mulf %20, %21 : vector<16x256xf32>
    %23 = arith.truncf %18 : vector<16x256xf32> to vector<16x256xbf16>
    %24 = arith.truncf %22 : vector<16x256xf32> to vector<16x256xbf16>
    %25 = tpu.concatenate %23, %24 in 1 : vector<16x256xbf16>, vector<16x256xbf16> -> vector<16x512xbf16>
    %c0_13 = arith.constant 0 : index
    %c0_14 = arith.constant 0 : index
    %26 = vector.load %arg5[%c0_13, %c0_14] : memref<512x128xbf16, #tpu.memory_space<vmem>>, vector<512x128xbf16>
    %cst_15 = arith.constant dense<0.000000e+00> : vector<16x128xf32>
    %27 = tpu.matmul %25, %26, %cst_15 {dimension_numbers = #tpu.dot_dimension_numbers<[1], [0], [0], [1], [0, 0, 1, 1], [], []>} : vector<16x512xbf16>, vector<512x128xbf16>, vector<16x128xf32> -> vector<16x128xf32>
    %c0_16 = arith.constant 0 : index
    %c0_17 = arith.constant 0 : index
    %28 = vector.load %arg6[%c0_16, %c0_17] : memref<1x128xf32, #tpu.memory_space<vmem>>, vector<1x128xf32>
    %29 = vector.broadcast %28 : vector<1x128xf32> to vector<16x128xf32>
    %30 = arith.addf %27, %29 : vector<16x128xf32>
    %cst_18 = arith.constant 0.000000e+00 : f32
    %31 = vector.broadcast %cst_18 : f32 to vector<16x128xf32>
    %32 = arith.cmpf ogt, %30, %31 : vector<16x128xf32>
    %c0_19 = arith.constant 0 : index
    %c0_20 = arith.constant 0 : index
    %33 = vector.load %arg7[%c0_19, %c0_20] : memref<1x128xf32, #tpu.memory_space<vmem>>, vector<1x128xf32>
    %34 = vector.broadcast %33 : vector<1x128xf32> to vector<16x128xf32>
    %35 = arith.mulf %34, %30 : vector<16x128xf32>
    %36 = arith.select %32, %30, %35 : vector<16x128xi1>, vector<16x128xf32>
    %c0_21 = arith.constant 0 : index
    %c0_22 = arith.constant 0 : index
    %37 = vector.load %arg18[%c0_21, %c0_22] : memref<16x128xf32, #tpu.memory_space<vmem>>, vector<16x128xf32>
    tpu.vector_store %arg18[%c0_21, %c0_22], %36 {strides = array<i32>} : memref<16x128xf32, #tpu.memory_space<vmem>>, vector<16x128xf32>,
    %c1_i32_23 = arith.constant 1 : i32
    %38 = tpu.dynamic_rotate %36 by %c1_i32_23 dim 0 : vector<16x128xf32>, i32 -> vector<16x128xf32>
    %39 = vector.broadcast %0 : vector<16x1xf32> to vector<16x128xf32>
    %40 = arith.mulf %38, %39 : vector<16x128xf32>
    %41 = arith.truncf %36 : vector<16x128xf32> to vector<16x128xbf16>
    %42 = arith.truncf %40 : vector<16x128xf32> to vector<16x128xbf16>
    %43 = tpu.concatenate %41, %42 in 1 : vector<16x128xbf16>, vector<16x128xbf16> -> vector<16x256xbf16>
    %c0_24 = arith.constant 0 : index
    %c0_25 = arith.constant 0 : index
    %44 = vector.load %arg8[%c0_24, %c0_25] : memref<256x128xbf16, #tpu.memory_space<vmem>>, vector<256x128xbf16>
    %cst_26 = arith.constant dense<0.000000e+00> : vector<16x128xf32>
    %45 = tpu.matmul %43, %44, %cst_26 {dimension_numbers = #tpu.dot_dimension_numbers<[1], [0], [0], [1], [0, 0, 1, 1], [], []>} : vector<16x256xbf16>, vector<256x128xbf16>, vector<16x128xf32> -> vector<16x128xf32>
    %c0_27 = arith.constant 0 : index
    %c0_28 = arith.constant 0 : index
    %46 = vector.load %arg9[%c0_27, %c0_28] : memref<1x128xf32, #tpu.memory_space<vmem>>, vector<1x128xf32>
    %47 = vector.broadcast %46 : vector<1x128xf32> to vector<16x128xf32>
    %48 = arith.addf %45, %47 : vector<16x128xf32>
    %cst_29 = arith.constant 0.000000e+00 : f32
    %49 = vector.broadcast %cst_29 : f32 to vector<16x128xf32>
    %50 = arith.cmpf ogt, %48, %49 : vector<16x128xf32>
    %c0_30 = arith.constant 0 : index
    %c0_31 = arith.constant 0 : index
    %51 = vector.load %arg10[%c0_30, %c0_31] : memref<1x128xf32, #tpu.memory_space<vmem>>, vector<1x128xf32>
    %52 = vector.broadcast %51 : vector<1x128xf32> to vector<16x128xf32>
    %53 = arith.mulf %52, %48 : vector<16x128xf32>
    %54 = arith.select %50, %48, %53 : vector<16x128xi1>, vector<16x128xf32>
    %c0_32 = arith.constant 0 : index
    %c0_33 = arith.constant 0 : index
    %55 = vector.load %arg19[%c0_32, %c0_33] : memref<16x128xf32, #tpu.memory_space<vmem>>, vector<16x128xf32>
    tpu.vector_store %arg19[%c0_32, %c0_33], %54 {strides = array<i32>} : memref<16x128xf32, #tpu.memory_space<vmem>>, vector<16x128xf32>,
    %c1_i32_34 = arith.constant 1 : i32
    %56 = tpu.dynamic_rotate %54 by %c1_i32_34 dim 0 : vector<16x128xf32>, i32 -> vector<16x128xf32>
    %57 = vector.broadcast %0 : vector<16x1xf32> to vector<16x128xf32>
    %58 = arith.mulf %56, %57 : vector<16x128xf32>
    %59 = arith.truncf %54 : vector<16x128xf32> to vector<16x128xbf16>
    %60 = arith.truncf %58 : vector<16x128xf32> to vector<16x128xbf16>
    %61 = tpu.concatenate %59, %60 in 1 : vector<16x128xbf16>, vector<16x128xbf16> -> vector<16x256xbf16>
    %c0_35 = arith.constant 0 : index
    %c0_36 = arith.constant 0 : index
    %62 = vector.load %arg11[%c0_35, %c0_36] : memref<256x256xbf16, #tpu.memory_space<vmem>>, vector<256x256xbf16>
    %cst_37 = arith.constant dense<0.000000e+00> : vector<16x256xf32>
    %63 = tpu.matmul %61, %62, %cst_37 {dimension_numbers = #tpu.dot_dimension_numbers<[1], [0], [0], [1], [0, 0, 1, 1], [], []>} : vector<16x256xbf16>, vector<256x256xbf16>, vector<16x256xf32> -> vector<16x256xf32>
    %c0_38 = arith.constant 0 : index
    %c0_39 = arith.constant 0 : index
    %64 = vector.load %arg12[%c0_38, %c0_39] : memref<1x256xf32, #tpu.memory_space<vmem>>, vector<1x256xf32>
    %65 = vector.broadcast %64 : vector<1x256xf32> to vector<16x256xf32>
    %66 = arith.addf %63, %65 : vector<16x256xf32>
    %cst_40 = arith.constant 0.000000e+00 : f32
    %67 = vector.broadcast %cst_40 : f32 to vector<16x256xf32>
    %68 = arith.cmpf ogt, %66, %67 : vector<16x256xf32>
    %c0_41 = arith.constant 0 : index
    %c0_42 = arith.constant 0 : index
    %69 = vector.load %arg13[%c0_41, %c0_42] : memref<1x256xf32, #tpu.memory_space<vmem>>, vector<1x256xf32>
    %70 = vector.broadcast %69 : vector<1x256xf32> to vector<16x256xf32>
    %71 = arith.mulf %70, %66 : vector<16x256xf32>
    %72 = arith.select %68, %66, %71 : vector<16x256xi1>, vector<16x256xf32>
    %c0_43 = arith.constant 0 : index
    %c0_44 = arith.constant 0 : index
    %73 = vector.load %arg20[%c0_43, %c0_44] : memref<16x256xf32, #tpu.memory_space<vmem>>, vector<16x256xf32>
    tpu.vector_store %arg20[%c0_43, %c0_44], %72 {strides = array<i32>} : memref<16x256xf32, #tpu.memory_space<vmem>>, vector<16x256xf32>,
    %c1_i32_45 = arith.constant 1 : i32
    %74 = tpu.dynamic_rotate %72 by %c1_i32_45 dim 0 : vector<16x256xf32>, i32 -> vector<16x256xf32>
    %75 = vector.broadcast %0 : vector<16x1xf32> to vector<16x256xf32>
    %76 = arith.mulf %74, %75 : vector<16x256xf32>
    %77 = arith.truncf %72 : vector<16x256xf32> to vector<16x256xbf16>
    %78 = arith.truncf %76 : vector<16x256xf32> to vector<16x256xbf16>
    %79 = tpu.concatenate %77, %78 in 1 : vector<16x256xbf16>, vector<16x256xbf16> -> vector<16x512xbf16>
    %c0_46 = arith.constant 0 : index
    %c0_47 = arith.constant 0 : index
    %80 = vector.load %arg14[%c0_46, %c0_47] : memref<512x512xbf16, #tpu.memory_space<vmem>>, vector<512x512xbf16>
    %cst_48 = arith.constant dense<0.000000e+00> : vector<16x512xf32>
    %81 = tpu.matmul %79, %80, %cst_48 {dimension_numbers = #tpu.dot_dimension_numbers<[1], [0], [0], [1], [0, 0, 1, 1], [], []>} : vector<16x512xbf16>, vector<512x512xbf16>, vector<16x512xf32> -> vector<16x512xf32>
    %c0_49 = arith.constant 0 : index
    %c0_50 = arith.constant 0 : index
    %82 = vector.load %arg15[%c0_49, %c0_50] : memref<1x512xf32, #tpu.memory_space<vmem>>, vector<1x512xf32>
    %83 = vector.broadcast %82 : vector<1x512xf32> to vector<16x512xf32>
    %84 = arith.addf %81, %83 : vector<16x512xf32>
    %cst_51 = arith.constant 0.000000e+00 : f32
    %85 = vector.broadcast %cst_51 : f32 to vector<16x512xf32>
    %86 = arith.cmpf ogt, %84, %85 : vector<16x512xf32>
    %c0_52 = arith.constant 0 : index
    %c0_53 = arith.constant 0 : index
    %87 = vector.load %arg16[%c0_52, %c0_53] : memref<1x512xf32, #tpu.memory_space<vmem>>, vector<1x512xf32>
    %88 = vector.broadcast %87 : vector<1x512xf32> to vector<16x512xf32>
    %89 = arith.mulf %88, %84 : vector<16x512xf32>
    %90 = arith.select %86, %84, %89 : vector<16x512xi1>, vector<16x512xf32>
    %c0_54 = arith.constant 0 : index
    %c0_55 = arith.constant 0 : index
    %91 = vector.load %arg21[%c0_54, %c0_55] : memref<16x512xf32, #tpu.memory_space<vmem>>, vector<16x512xf32>
    tpu.vector_store %arg21[%c0_54, %c0_55], %90 {strides = array<i32>} : memref<16x512xf32, #tpu.memory_space<vmem>>, vector<16x512xf32>,
    return
  }
}

</mosaic_0001>

<bundles_post_ra>
// kernel: _lambda_.1
= control target key start
LH: loop header
LB: loop body
LE: loop exit
PB: predicated region body
PF: predicated region fallthrough
CT: control target
= control target key end

     0   :  { %v2936_v0 = vmov 0   ;;  %v68_v46 = vlaneseq  ;;  %s3942_s1 = inlined_call_operand.vmem [shape: f32[16,1], index: 1, kind: input, shape index: {}]   ;;  %s3943_s2 = inlined_call_operand.vmem [shape: bf16[256,256], index: 2, kind: input, shape index: {}]   ;;  %s3944_s5 = inlined_call_operand.vmem [shape: bf16[512,128], index: 5, kind: input, shape index: {}]   ;;  %s3945_s0 = inlined_call_operand.vmem [shape: f32[16,128], index: 0, kind: input, shape index: {}]   ;;  %s3946_s3 = inlined_call_operand.vmem [shape: f32[1,256], index: 3, kind: input, shape index: {}]   ;;  %s3947_s4 = inlined_call_operand.vmem [shape: f32[1,256], index: 4, kind: input, shape index: {}]   ;;  %s3948_s17 = inlined_call_operand.vmem [shape: f32[16,256], index: 17, kind: output, shape index: {0}]   ;;  %s3949_s8 = inlined_call_operand.vmem [shape: bf16[256,128], index: 8, kind: input, shape index: {}]   ;;  %s3950_s11 = inlined_call_operand.vmem [shape: bf16[256,256], index: 11, kind: input, shape index: {}]   ;;  %s3951_s6 = inlined_call_operand.vmem [shape: f32[1,128], index: 6, kind: input, shape index: {}]   ;;  %s3952_s7 = inlined_call_operand.vmem [shape: f32[1,128], index: 7, kind: input, shape index: {}, may-alias: {7,10}]   ;;  %s3953_s18 = inlined_call_operand.vmem [shape: f32[16,128], index: 18, kind: output, shape index: {1}]   ;;  %s3954_s14 = inlined_call_operand.vmem [shape: bf16[512,512], index: 14, kind: input, shape index: {}]   ;;  %s3955_s9 = inlined_call_operand.vmem [shape: f32[1,128], index: 9, kind: input, shape index: {}]   ;;  %s3956_s10 = inlined_call_operand.vmem [shape: f32[1,128], index: 10, kind: input, shape index: {}, may-alias: {7,10}]   ;;  %s3957_s19 = inlined_call_operand.vmem [shape: f32[16,128], index: 19, kind: output, shape index: {2}]   ;;  %s3958_s12 = inlined_call_operand.vmem [shape: f32[1,256], index: 12, kind: input, shape index: {}]   ;;  %s3959_s13 = inlined_call_operand.vmem [shape: f32[1,256], index: 13, kind: input, shape index: {}]   ;;  %s3960_s20 = inlined_call_operand.vmem [shape: f32[16,256], index: 20, kind: output, shape index: {3}]   ;;  %s3961_s15 = inlined_call_operand.vmem [shape: f32[1,512], index: 15, kind: input, shape index: {}]   ;;  %s3962_s16 = inlined_call_operand.vmem [shape: f32[1,512], index: 16, kind: input, shape index: {}]   ;;  %s3963_s21 = inlined_call_operand.vmem [shape: f32[16,512], index: 21, kind: output, shape index: {4}]  }
   0x1   :  { %3968 = sst [smem:[#allocation2_spill]] %s3942_s1  ;;  %2599 = vset.pattern.permute.xlu0 %v2936_v0 }
   0x2   :  { %3969 = sst [smem:[#allocation3_spill]] %s3943_s2  ;;  %s3974_s26 = sld [smem:[#allocation2_spill]]  ;;  %v3188_v49 = vshrl.u32 %v68_v46, 7 }
   0x3   :  { %3970 = sst [smem:[#allocation4_spill]] %s3944_s5  ;;  %s3975_s1 = sld [smem:[#allocation3_spill]] }
   0x4   :  { %3971 = sst [smem:[#allocation5_spill]] %s3945_s0  ;;  %vm70_vm0 = vcmp.lt.s32.totalorder %v3188_v49, 1 }
   0x5   :  { %3972 = sst [smem:[#allocation6_spill]] %s3946_s3  ;;  %s3977_s5 = sld [smem:[#allocation5_spill]] }
   0x6   :  { %3973 = sst [smem:[#allocation7_spill]] %s3947_s4  ;;  %s3976_s4 = sld [smem:[#allocation4_spill]] }
   0x7   :  { %s3979_s28 = sld [smem:[#allocation7_spill]] }
   0x8   :  { %v62_v1 = vld [vmem:[%s3974_s26] sm:$0xff]  ;;  %v63_v2 = vld [vmem:[%s3974_s26 + $0x8] sm:$0xff] }
   0x9   :  { %75 = vperm.xlu0 %2599, %v62_v1   ;;  %v2600_v3 = vld [vmem:[%s3975_s1 + $0x4] ss:$8 sps:$4 sm:$0xff]   ;;  %v2602_v4 = vld [vmem:[%s3975_s1] ss:$8 sps:$4 sm:$0xff]   ;;  %v2603_v5 = vld [vmem:[%s3975_s1 + $0x14] ss:$8 sps:$4 sm:$0xff]  }
   0xa   :  { %291 = vmatprep.subr.bf16.mxu0 %v2600_v3  ;;  %v2605_v6 = vld [vmem:[%s3975_s1 + $0x10] ss:$8 sps:$4 sm:$0xff]   ;;  %v2606_v7 = vld [vmem:[%s3975_s1 + $0x24] ss:$8 sps:$4 sm:$0xff]   ;;  %v2608_v8 = vld [vmem:[%s3975_s1 + $0x20] ss:$8 sps:$4 sm:$0xff]  }
   0xb   :  { %292 = vmatpush1.bf16.msra.mxu0 %v2602_v4  ;;  %v2609_v9 = vld [vmem:[%s3975_s1 + $0x34] ss:$8 sps:$4 sm:$0xff]   ;;  %v2611_v10 = vld [vmem:[%s3975_s1 + $0x30] ss:$8 sps:$4 sm:$0xff]   ;;  %v2612_v11 = vld [vmem:[%s3975_s1 + $0x44] ss:$8 sps:$4 sm:$0xff]  }
   0xc   :  { %293 = vmatprep.subr.bf16.mxu0 %v2603_v5  ;;  %v2614_v12 = vld [vmem:[%s3975_s1 + $0x40] ss:$8 sps:$4 sm:$0xff]   ;;  %v2615_v13 = vld [vmem:[%s3975_s1 + $0x54] ss:$8 sps:$4 sm:$0xff]   ;;  %v2617_v14 = vld [vmem:[%s3975_s1 + $0x50] ss:$8 sps:$4 sm:$0xff]  }
   0xd   :  { %80 = vperm.xlu0 %2599, %v63_v2   ;;  %v2618_v15 = vld [vmem:[%s3975_s1 + $0x64] ss:$8 sps:$4 sm:$0xff]   ;;  %v2620_v16 = vld [vmem:[%s3975_s1 + $0x60] ss:$8 sps:$4 sm:$0xff]   ;;  %v2621_v17 = vld [vmem:[%s3975_s1 + $0x74] ss:$8 sps:$4 sm:$0xff]  }
   0xe   :  { %v2648_v18 = vld [vmem:[%s3976_s4 + $0x40] sm:$0xff]   ;;  %v2650_v20 = vld [vmem:[%s3976_s4 + $0x48] sm:$0xff]   ;;  %v2652_v22 = vld [vmem:[%s3976_s4 + $0x50] sm:$0xff]   ;;  %v3220_v2 = vsub.s32 0, %v3188_v49  ;;  %v3226_v4 = vsub.s32 1, %v3188_v49 }
   0xf   :  { %294 = vmatpush1.bf16.msra.mxu0 %v2605_v6  ;;  %v2649_v19 = vld [vmem:[%s3976_s4] sm:$0xff]   ;;  %2516 = vmatprep.subr.bf16.mxu1 %v2648_v18  ;;  %v2651_v21 = vld [vmem:[%s3976_s4 + $0x8] sm:$0xff]   ;;  %v2623_v23 = vld [vmem:[%s3975_s1 + $0x70] ss:$8 sps:$4 sm:$0xff]  }
  0x10   :  { %295 = vmatprep.subr.bf16.mxu0 %v2606_v7  ;;  %2517 = vmatpush3.bf16.msra.mxu1 %v2649_v19  ;;  %v2624_v24 = vld [vmem:[%s3975_s1 + $0x84] ss:$8 sps:$4 sm:$0xff]   ;;  %v2626_v25 = vld [vmem:[%s3975_s1 + $0x80] ss:$8 sps:$4 sm:$0xff]   ;;  %v2653_v26 = vld [vmem:[%s3976_s4 + $0x10] sm:$0xff]  }
  0x11   :  { %2518 = vmatprep.subr.bf16.mxu1 %v2650_v20  ;;  %v2654_v27 = vld [vmem:[%s3976_s4 + $0x58] sm:$0xff]   ;;  %v2656_v30 = vld [vmem:[%s3976_s4 + $0x60] sm:$0xff]   ;;  %v2658_v34 = vld [vmem:[%s3976_s4 + $0x68] sm:$0xff]  }
  0x12   :  { %v2627_v28 = vld [vmem:[%s3975_s1 + $0x94] ss:$8 sps:$4 sm:$0xff]   ;;  %v2629_v31 = vld [vmem:[%s3975_s1 + $0x90] ss:$8 sps:$4 sm:$0xff]   ;;  %v2630_v32 = vld [vmem:[%s3975_s1 + $0xa4] ss:$8 sps:$4 sm:$0xff]  }
  0x13   :  { %296 = vmatpush1.bf16.msra.mxu0 %v2608_v8  ;;  %v2655_v29 = vld [vmem:[%s3976_s4 + $0x18] sm:$0xff]   ;;  %v2657_v33 = vld [vmem:[%s3976_s4 + $0x20] sm:$0xff]   ;;  %v65_v48 = vld [vmem:[%s3977_s5 + $0x8] sm:$0xff] }
  0x14   :  { %297 = vmatprep.subr.bf16.mxu0 %v2609_v9  ;;  %2519 = vmatpush3.bf16.msra.mxu1 %v2651_v21  ;;  %v2632_v35 = vld [vmem:[%s3975_s1 + $0xa0] ss:$8 sps:$4 sm:$0xff]   ;;  %v2633_v36 = vld [vmem:[%s3975_s1 + $0xb4] ss:$8 sps:$4 sm:$0xff]   ;;  %v2635_v37 = vld [vmem:[%s3975_s1 + $0xb0] ss:$8 sps:$4 sm:$0xff]  }
  0x15   :  { %2520 = vmatprep.subr.bf16.mxu1 %v2652_v22  ;;  %v2636_v38 = vld [vmem:[%s3975_s1 + $0xc4] ss:$8 sps:$4 sm:$0xff]   ;;  %v2638_v39 = vld [vmem:[%s3975_s1 + $0xc0] ss:$8 sps:$4 sm:$0xff]   ;;  %v2639_v40 = vld [vmem:[%s3975_s1 + $0xd4] ss:$8 sps:$4 sm:$0xff]  }
  0x16   :  { %v2641_v41 = vld [vmem:[%s3975_s1 + $0xd0] ss:$8 sps:$4 sm:$0xff]   ;;  %v2642_v42 = vld [vmem:[%s3975_s1 + $0xe4] ss:$8 sps:$4 sm:$0xff]   ;;  %v2644_v43 = vld [vmem:[%s3975_s1 + $0xe0] ss:$8 sps:$4 sm:$0xff]  }
  0x17   :  { %298 = vmatpush1.bf16.msra.mxu0 %v2611_v10  ;;  %v2645_v44 = vld [vmem:[%s3975_s1 + $0xf4] ss:$8 sps:$4 sm:$0xff]   ;;  %v2647_v45 = vld [vmem:[%s3975_s1 + $0xf0] ss:$8 sps:$4 sm:$0xff]   ;;  %v64_v47 = vld [vmem:[%s3977_s5] sm:$0xff]  ;;  %v67_v51 = vrot.slane %v65_v48, 7 }
  0x18   :  { %299 = vmatprep.subr.bf16.mxu0 %v2612_v11  ;;  %2521 = vmatpush3.bf16.msra.mxu1 %v2653_v26  ;;  %v66_v50 = vrot.slane %v64_v47, 7  ;;  %v85_v58 = vpack.c.bf16 %v65_v48, %v64_v47  ;;  %v2659_v60 = vld [vmem:[%s3976_s4 + $0x28] sm:$0xff]   ;;  %v2660_v61 = vld [vmem:[%s3976_s4 + $0x70] sm:$0xff]   ;;  %v2662_v63 = vld [vmem:[%s3976_s4 + $0x78] sm:$0xff]   ;;  %s3978_s1 = sld [smem:[#allocation6_spill]] }
  0x19   :  { %2522 = vmatprep.subr.bf16.mxu1 %v2654_v27  ;;  %v2661_v62 = vld [vmem:[%s3976_s4 + $0x30] sm:$0xff]   ;;  %v2663_v0 = vld [vmem:[%s3976_s4 + $0x38] sm:$0xff]   ;;  %v2664_v1 = vld [vmem:[%s3976_s4 + $0xc0] sm:$0xff]  }
  0x1a   :  { %v71_v53 = vsel %vm70_vm0, %v66_v50, %v67_v51  ;;  %v72_v54 = vsel %vm70_vm0, %v67_v51, %v66_v50  ;;  %v338_v5 = vld [vmem:[%s3979_s28] sm:$0x3]  ;;  %v2669_v46 = vld [vmem:[%s3976_s4 + $0x90] sm:$0xff]   ;;  %v2670_v47 = vld [vmem:[%s3976_s4 + $0xd8] sm:$0xff]  }
  0x1b   :  { %300 = vmatpush1.bf16.msra.mxu0 %v2614_v12  ;;  %v343_v8 = vrot.slane %v338_v5, %v3220_v2  ;;  %v347_v10 = vrot.slane %v338_v5, %v3226_v4  ;;  %v2671_v48 = vld [vmem:[%s3976_s4 + $0x98] sm:$0xff]   ;;  %v2672_v50 = vld [vmem:[%s3976_s4 + $0xe0] sm:$0xff]  }
  0x1c   :  { %301 = vmatprep.subr.bf16.mxu0 %v2615_v13  ;;  %2523 = vmatpush3.bf16.msra.mxu1 %v2655_v29  ;;  %v2673_v51 = vld [vmem:[%s3976_s4 + $0xa0] sm:$0xff]   ;;  %v2687_v5 = vld [vmem:[%s3949_s8 + $0x18] sm:$0xff]  }
  0x1d   :  { %2524 = vmatprep.subr.bf16.mxu1 %v2656_v30 }
  0x1e   :  { %v119_v3 = vld [vmem:[%s3978_s1] sm:$0x3] }
  0x1f   :  { %302 = vmatpush1.bf16.msra.mxu0 %v2617_v14  ;;  %v124_v6 = vrot.slane %v119_v3, %v3220_v2  ;;  %v128_v7 = vrot.slane %v119_v3, %v3226_v4  ;;  %v2686_v3 = vld [vmem:[%s3949_s8 + $0x58] sm:$0xff]  }
  0x20   :  { %303 = vmatprep.subr.bf16.mxu0 %v2618_v15  ;;  %2525 = vmatpush3.bf16.msra.mxu1 %v2657_v33  ;;  %v2666_v33 = vld [vmem:[%s3976_s4 + $0xc8] sm:$0xff]  }
  0x21   :  { %2526 = vmatprep.subr.bf16.mxu1 %v2658_v34 }
  0x23   :  { %304 = vmatpush1.bf16.msra.mxu0 %v2620_v16 }
  0x24   :  { %305 = vmatprep.subr.bf16.mxu0 %v2621_v17  ;;  %2527 = vmatpush3.bf16.msra.mxu1 %v2659_v60  ;;  %v2680_v60 = vld [vmem:[%s3949_s8 + $0x40] sm:$0xff]  }
  0x25   :  { %2528 = vmatprep.subr.bf16.mxu1 %v2660_v61  ;;  %v2681_v61 = vld [vmem:[%s3949_s8] sm:$0xff]  }
  0x27   :  { %306 = vmatpush1.bf16.msra.mxu0 %v2623_v23 }
  0x28   :  { %307 = vmatprep.subr.bf16.mxu0 %v2624_v24  ;;  %2529 = vmatpush3.bf16.msra.mxu1 %v2661_v62  ;;  %v2682_v62 = vld [vmem:[%s3949_s8 + $0x48] sm:$0xff]  }
  0x29   :  { %2530 = vmatprep.subr.bf16.mxu1 %v2662_v63  ;;  %v2683_v63 = vld [vmem:[%s3949_s8 + $0x8] sm:$0xff]  }
  0x2b   :  { %308 = vmatpush1.bf16.msra.mxu0 %v2626_v25 }
  0x2c   :  { %309 = vmatprep.subr.bf16.mxu0 %v2627_v28  ;;  %2531 = vmatpush3.bf16.msra.mxu1 %v2663_v0  ;;  %v2684_v0 = vld [vmem:[%s3949_s8 + $0x50] sm:$0xff]  }
  0x2d   :  { %2538 = vmatprep.subr.bf16.mxu1 %v2664_v1  ;;  %v2685_v1 = vld [vmem:[%s3949_s8 + $0x10] sm:$0xff]  }
  0x2f   :  { %310 = vmatpush1.bf16.msra.mxu0 %v2629_v31 }
  0x30   :  { %311 = vmatprep.subr.bf16.mxu0 %v2630_v32  ;;  %v2665_v32 = vld [vmem:[%s3976_s4 + $0x80] sm:$0xff]  }
  0x33   :  { %312 = vmatpush1.bf16.msra.mxu0 %v2632_v35 }
  0x34   :  { %313 = vmatprep.subr.bf16.mxu0 %v2633_v36 }
  0x37   :  { %314 = vmatpush1.bf16.msra.mxu0 %v2635_v37 }
  0x38   :  { %315 = vmatprep.subr.bf16.mxu0 %v2636_v38 }
  0x3b   :  { %316 = vmatpush1.bf16.msra.mxu0 %v2638_v39 }
  0x3c   :  { %317 = vmatprep.subr.bf16.mxu0 %v2639_v40 }
  0x3f   :  { %318 = vmatpush1.bf16.msra.mxu0 %v2641_v41 }
  0x40   :  { %319 = vmatprep.subr.bf16.mxu0 %v2642_v42  ;;  %v2667_v42 = vld [vmem:[%s3976_s4 + $0x88] sm:$0xff]  }
  0x43   :  { %320 = vmatpush1.bf16.msra.mxu0 %v2644_v43 }
  0x44   :  { %321 = vmatprep.subr.bf16.mxu0 %v2645_v44 }
  0x47   :  { %322 = vmatpush1.bf16.msra.mxu0 %v2647_v45  ;;  %v2668_v45 = vld [vmem:[%s3976_s4 + $0xd0] sm:$0xff]  }
  0x48   :  { %2560 = vmatprep.subr.bf16.mxu0 %v2680_v60 }
  0x88   :  { %v3191_v52 = vpop.permute.xlu0 %75 }
  0x89   :  { %v83_v56 = vmul.f32 %v3191_v52, %v72_v54  ;;  %v2675_v54 = vld [vmem:[%s3976_s4 + $0xa8] sm:$0xff]  }
  0x8c   :  { %v3197_v55 = vpop.permute.xlu0 %80 }
  0x8d   :  { %v84_v57 = vmul.f32 %v3197_v55, %v71_v53  ;;  %v2674_v53 = vld [vmem:[%s3976_s4 + $0xe8] sm:$0xff]  }
  0x8f   :  { %v86_v59 = vpack.c.bf16 %v84_v57, %v83_v56  ;;  %v2676_v56 = vld [vmem:[%s3976_s4 + $0xf0] sm:$0xff]  }
  0x90   :  { %v2677_v57 = vld [vmem:[%s3976_s4 + $0xb0] sm:$0xff]  }
  0x91   :  { %323 = vmatprep.mubr.bf16.mxu0 %v86_v59  ;;  %v2679_v59 = vld [vmem:[%s3976_s4 + $0xb8] sm:$0xff]  }
  0x92   :  { %324 = vmatmul.mubr.bf16.vlgmr.msra.gmra.mrb[0].mxu0 %v85_v58  ;;  %v2678_v58 = vld [vmem:[%s3976_s4 + $0xf8] sm:$0xff]  }
  0x93   :  { %2561 = vmatpush3.bf16.msra.mxu0 %v2681_v61 }
  0x94   :  { %2562 = vmatprep.subr.bf16.mxu0 %v2682_v62 }
  0x97   :  { %2563 = vmatpush3.bf16.msra.mxu0 %v2683_v63 }
  0x98   :  { %2564 = vmatprep.subr.bf16.mxu0 %v2684_v0 }
  0x9b   :  { %2565 = vmatpush3.bf16.msra.mxu0 %v2685_v1 }
  0x9c   :  { %2566 = vmatprep.subr.bf16.mxu0 %v2686_v3 }
  0x9f   :  { %2567 = vmatpush3.bf16.msra.mxu0 %v2687_v5 }
 0x165   :  { %v325_v9 = vpop.f32.mrb[0].mxu0 }
 0x166   :  { %v326_v11 = vadd.f32 %v325_v9, %v124_v6  ;;  %v327_v12 = vpop.f32.mrb[1].mxu0  ;;  %v2691_v9 = vld [vmem:[%s3949_s8 + $0x28] sm:$0xff]  }
 0x167   :  { %v328_v13 = vadd.f32 %v327_v12, %v128_v7  ;;  %v329_v14 = vpop.f32.mrb[2].mxu0  ;;  %v2694_v12 = vld [vmem:[%s3949_s8 + $0x78] sm:$0xff]  }
 0x168   :  { %vm334_vm1 = vcmp.gt.f32.partialorder %v326_v11, 0.0  ;;  %v350_v15 = vmul.f32 %v343_v8, %v326_v11  ;;  %v330_v16 = vadd.f32 %v329_v14, %v124_v6  ;;  %v331_v17 = vpop.f32.mrb[3].mxu0  ;;  %v2688_v6 = vld [vmem:[%s3949_s8 + $0x60] sm:$0xff]  }
 0x169   :  { %v351_v18 = vmul.f32 %v347_v10, %v328_v13  ;;  %v332_v19 = vadd.f32 %v331_v17, %v128_v7  ;;  %vm335_vm2 = vcmp.gt.f32.partialorder %v328_v13, 0.0  ;;  %v2689_v7 = vld [vmem:[%s3949_s8 + $0x20] sm:$0xff]   ;;  %2568 = vmatprep.subr.bf16.mxu0 %v2688_v6  ;;  %v2699_v17 = vld [vmem:[%s3950_s11 + $0x10] ss:$8 sps:$4 sm:$0xff]  }
 0x16a   :  { %v354_v20 = vsel %vm334_vm1, %v326_v11, %v350_v15  ;;  %vm336_vm3 = vcmp.gt.f32.partialorder %v330_v16, 0.0  ;;  %v352_v21 = vmul.f32 %v343_v8, %v330_v16  ;;  %2569 = vmatpush3.bf16.msra.mxu0 %v2689_v7  ;;  %v2690_v8 = vld [vmem:[%s3949_s8 + $0x68] sm:$0xff]   ;;  %v2693_v11 = vld [vmem:[%s3949_s8 + $0x30] sm:$0xff]  }
 0x16b   :  { %358 = vst [vmem:[%s3948_s17] sm:$0xff] %v354_v20  ;;  %v353_v22 = vmul.f32 %v347_v10, %v332_v19  ;;  %vm337_vm4 = vcmp.gt.f32.partialorder %v332_v19, 0.0  ;;  %v355_v23 = vsel %vm335_vm2, %v328_v13, %v351_v18  ;;  %v362_v25 = vrot.slane %v354_v20, 7  ;;  %2570 = vmatprep.subr.bf16.mxu0 %v2690_v8  ;;  %v2692_v10 = vld [vmem:[%s3949_s8 + $0x70] sm:$0xff]   ;;  %v2695_v13 = vld [vmem:[%s3949_s8 + $0x38] sm:$0xff]   ;;  %v2696_v14 = vld [vmem:[%s3950_s11] ss:$8 sps:$4 sm:$0xff]  }
 0x16c   :  { %v356_v24 = vsel %vm336_vm3, %v330_v16, %v352_v21  ;;  %359 = vst [vmem:[%s3948_s17 + $0x8] sm:$0xff] %v355_v23  ;;  %v363_v29 = vrot.slane %v355_v23, 7  ;;  %v2698_v15 = vld [vmem:[%s3950_s11 + $0x4] ss:$8 sps:$4 sm:$0xff]   ;;  %v2701_v16 = vld [vmem:[%s3950_s11 + $0x14] ss:$8 sps:$4 sm:$0xff]  }
 0x16d   :  { %360 = vst [vmem:[%s3948_s17 + $0x10] sm:$0xff] %v356_v24  ;;  %v364_v26 = vrot.slane %v356_v24, 7  ;;  %v357_v27 = vsel %vm337_vm4, %v332_v19, %v353_v22  ;;  %v374_v28 = vpack.c.bf16 %v356_v24, %v354_v20  ;;  %v2704_v18 = vld [vmem:[%s3950_s11 + $0x24] ss:$8 sps:$4 sm:$0xff]   ;;  %v2702_v19 = vld [vmem:[%s3950_s11 + $0x20] ss:$8 sps:$4 sm:$0xff]  }
 0x16e   :  { %361 = vst [vmem:[%s3948_s17 + $0x18] sm:$0xff] %v357_v27  ;;  %v365_v30 = vrot.slane %v357_v27, 7  ;;  %v375_v31 = vpack.c.bf16 %v357_v27, %v355_v23  ;;  %2571 = vmatpush3.bf16.msra.mxu0 %v2691_v9  ;;  %v2707_v20 = vld [vmem:[%s3950_s11 + $0x34] ss:$8 sps:$4 sm:$0xff]   ;;  %v2705_v21 = vld [vmem:[%s3950_s11 + $0x30] ss:$8 sps:$4 sm:$0xff]  }
 0x16f   :  { %v366_v34 = vsel %vm70_vm0, %v362_v25, %v364_v26  ;;  %v368_v35 = vsel %vm70_vm0, %v364_v26, %v362_v25  ;;  %2572 = vmatprep.subr.bf16.mxu0 %v2692_v10  ;;  %v2710_v22 = vld [vmem:[%s3950_s11 + $0x44] ss:$8 sps:$4 sm:$0xff]   ;;  %v2708_v23 = vld [vmem:[%s3950_s11 + $0x40] ss:$8 sps:$4 sm:$0xff]   ;;  %v2713_v24 = vld [vmem:[%s3950_s11 + $0x54] ss:$8 sps:$4 sm:$0xff]  }
 0x170   :  { %673 = vmatprep.mubr.bf16.mxu1 %v375_v31  ;;  %v367_v36 = vsel %vm70_vm0, %v363_v29, %v365_v30  ;;  %v369_v37 = vsel %vm70_vm0, %v365_v30, %v363_v29  ;;  %v370_v38 = vmul.f32 %v368_v35, %v3191_v52  ;;  %v372_v39 = vmul.f32 %v366_v34, %v3197_v55  ;;  %v2711_v25 = vld [vmem:[%s3950_s11 + $0x50] ss:$8 sps:$4 sm:$0xff]   ;;  %v2716_v26 = vld [vmem:[%s3950_s11 + $0x64] ss:$8 sps:$4 sm:$0xff]   ;;  %v2714_v27 = vld [vmem:[%s3950_s11 + $0x60] ss:$8 sps:$4 sm:$0xff]  }
 0x171   :  { %674 = vmatmul.mubr.bf16.vlgmr.msra.gmra.mrb[0].mxu1 %v374_v28  ;;  %v371_v40 = vmul.f32 %v369_v37, %v3191_v52  ;;  %v373_v41 = vmul.f32 %v367_v36, %v3197_v55  ;;  %v2719_v28 = vld [vmem:[%s3950_s11 + $0x74] ss:$8 sps:$4 sm:$0xff]   ;;  %v2717_v29 = vld [vmem:[%s3950_s11 + $0x70] ss:$8 sps:$4 sm:$0xff]   ;;  %v2722_v30 = vld [vmem:[%s3950_s11 + $0x84] ss:$8 sps:$4 sm:$0xff]  }
 0x172   :  { %2539 = vmatpush3.bf16.msra.mxu1 %v2665_v32  ;;  %v376_v43 = vpack.c.bf16 %v372_v39, %v370_v38  ;;  %2573 = vmatpush3.bf16.msra.mxu0 %v2693_v11  ;;  %v2720_v31 = vld [vmem:[%s3950_s11 + $0x80] ss:$8 sps:$4 sm:$0xff]   ;;  %v2725_v32 = vld [vmem:[%s3950_s11 + $0x94] ss:$8 sps:$4 sm:$0xff]   ;;  %v2728_v34 = vld [vmem:[%s3950_s11 + $0xa4] ss:$8 sps:$4 sm:$0xff]  }
 0x173   :  { %2540 = vmatprep.subr.bf16.mxu1 %v2666_v33  ;;  %v377_v44 = vpack.c.bf16 %v373_v41, %v371_v40  ;;  %2574 = vmatprep.subr.bf16.mxu0 %v2694_v12  ;;  %v2723_v33 = vld [vmem:[%s3950_s11 + $0x90] ss:$8 sps:$4 sm:$0xff]   ;;  %v2726_v35 = vld [vmem:[%s3950_s11 + $0xa0] ss:$8 sps:$4 sm:$0xff]   ;;  %v2731_v36 = vld [vmem:[%s3950_s11 + $0xb4] ss:$8 sps:$4 sm:$0xff]  }
 0x174   :  { %v2729_v37 = vld [vmem:[%s3950_s11 + $0xb0] ss:$8 sps:$4 sm:$0xff]   ;;  %v2734_v9 = vld [vmem:[%s3950_s11 + $0xc4] ss:$8 sps:$4 sm:$0xff]   ;;  %v2732_v10 = vld [vmem:[%s3950_s11 + $0xc0] ss:$8 sps:$4 sm:$0xff]  }
 0x175   :  { %714 = vmatprep.mubr.bf16.mxu1 %v377_v44  ;;  %v2304_v44 = vld [vmem:[%s3951_s6] ss:$0 sm:$0xff]  ;;  %v2737_v11 = vld [vmem:[%s3950_s11 + $0xd4] ss:$8 sps:$4 sm:$0xff]   ;;  %v2735_v12 = vld [vmem:[%s3950_s11 + $0xd0] ss:$8 sps:$4 sm:$0xff]  }
 0x176   :  { %2541 = vmatpush3.bf16.msra.mxu1 %v2667_v42  ;;  %2575 = vmatpush3.bf16.msra.mxu0 %v2695_v13  ;;  %v2740_v13 = vld [vmem:[%s3950_s11 + $0xe4] ss:$8 sps:$4 sm:$0xff]  }
 0x177   :  { %2542 = vmatprep.subr.bf16.mxu1 %v2668_v45 }
 0x17a   :  { %2543 = vmatpush3.bf16.msra.mxu1 %v2669_v46 }
 0x17b   :  { %2544 = vmatprep.subr.bf16.mxu1 %v2670_v47 }
 0x17e   :  { %2545 = vmatpush3.bf16.msra.mxu1 %v2671_v48 }
 0x17f   :  { %2546 = vmatprep.subr.bf16.mxu1 %v2672_v50 }
 0x182   :  { %2547 = vmatpush3.bf16.msra.mxu1 %v2673_v51  ;;  %v2337_v51 = vld [vmem:[%s3952_s7] ss:$0 sm:$0xff] }
 0x183   :  { %2548 = vmatprep.subr.bf16.mxu1 %v2674_v53 }
 0x186   :  { %2549 = vmatpush3.bf16.msra.mxu1 %v2675_v54 }
 0x187   :  { %2550 = vmatprep.subr.bf16.mxu1 %v2676_v56 }
 0x18a   :  { %2551 = vmatpush3.bf16.msra.mxu1 %v2677_v57 }
 0x18b   :  { %2552 = vmatprep.subr.bf16.mxu1 %v2678_v58 }
 0x18e   :  { %2553 = vmatpush3.bf16.msra.mxu1 %v2679_v59 }
 0x18f   :  { %1149 = vmatprep.subr.bf16.mxu1 %v2698_v15  ;;  %v2743_v15 = vld [vmem:[%s3950_s11 + $0xf4] ss:$8 sps:$4 sm:$0xff]  }
 0x191   :  { %715 = vmatmul.mubr.bf16.vlgmr.msra.gmra.mrb[4].mxu1 %v376_v43 }
 0x192   :  { %1150 = vmatpush1.bf16.msra.mxu1 %v2696_v14  ;;  %v2738_v14 = vld [vmem:[%s3950_s11 + $0xe0] ss:$8 sps:$4 sm:$0xff]  }
 0x193   :  { %1151 = vmatprep.subr.bf16.mxu1 %v2701_v16  ;;  %v2741_v16 = vld [vmem:[%s3950_s11 + $0xf0] ss:$8 sps:$4 sm:$0xff]  }
 0x196   :  { %1152 = vmatpush1.bf16.msra.mxu1 %v2699_v17  ;;  %v2744_v17 = vld [vmem:[%s3954_s14] ss:$16 sps:$4 sm:$0xff]  }
 0x197   :  { %1153 = vmatprep.subr.bf16.mxu1 %v2704_v18  ;;  %v2746_v18 = vld [vmem:[%s3954_s14 + $0x4] ss:$16 sps:$4 sm:$0xff]  }
 0x198   :  { %2026 = vmatprep.subr.bf16.mxu0 %v2746_v18  ;;  %v2779_v18 = vld [vmem:[%s3954_s14 + $0xac] ss:$16 sps:$4 sm:$0xff]  }
 0x19a   :  { %1154 = vmatpush1.bf16.msra.mxu1 %v2702_v19  ;;  %v2749_v19 = vld [vmem:[%s3954_s14 + $0xc] ss:$16 sps:$4 sm:$0xff]  }
 0x19b   :  { %1155 = vmatprep.subr.bf16.mxu1 %v2707_v20  ;;  %v2752_v20 = vld [vmem:[%s3954_s14 + $0x24] ss:$16 sps:$4 sm:$0xff]  }
 0x19e   :  { %1156 = vmatpush1.bf16.msra.mxu1 %v2705_v21  ;;  %v2750_v21 = vld [vmem:[%s3954_s14 + $0x20] ss:$16 sps:$4 sm:$0xff]  }
 0x19f   :  { %1157 = vmatprep.subr.bf16.mxu1 %v2710_v22  ;;  %v2758_v22 = vld [vmem:[%s3954_s14 + $0x44] ss:$16 sps:$4 sm:$0xff]  }
 0x1a2   :  { %1158 = vmatpush1.bf16.msra.mxu1 %v2708_v23  ;;  %v2756_v23 = vld [vmem:[%s3954_s14 + $0x40] ss:$16 sps:$4 sm:$0xff]  }
 0x1a3   :  { %1159 = vmatprep.subr.bf16.mxu1 %v2713_v24  ;;  %v2764_v24 = vld [vmem:[%s3954_s14 + $0x64] ss:$16 sps:$4 sm:$0xff]  }
 0x1a6   :  { %1160 = vmatpush1.bf16.msra.mxu1 %v2711_v25  ;;  %v2762_v25 = vld [vmem:[%s3954_s14 + $0x60] ss:$16 sps:$4 sm:$0xff]  }
 0x1a7   :  { %1161 = vmatprep.subr.bf16.mxu1 %v2716_v26  ;;  %v2770_v26 = vld [vmem:[%s3954_s14 + $0x84] ss:$16 sps:$4 sm:$0xff]  }
 0x1aa   :  { %1162 = vmatpush1.bf16.msra.mxu1 %v2714_v27  ;;  %v2768_v27 = vld [vmem:[%s3954_s14 + $0x80] ss:$16 sps:$4 sm:$0xff]  }
 0x1ab   :  { %1163 = vmatprep.subr.bf16.mxu1 %v2719_v28  ;;  %v2776_v28 = vld [vmem:[%s3954_s14 + $0xa4] ss:$16 sps:$4 sm:$0xff]  }
 0x1ae   :  { %1164 = vmatpush1.bf16.msra.mxu1 %v2717_v29  ;;  %v2774_v29 = vld [vmem:[%s3954_s14 + $0xa0] ss:$16 sps:$4 sm:$0xff]  }
 0x1af   :  { %1165 = vmatprep.subr.bf16.mxu1 %v2722_v30  ;;  %v2782_v30 = vld [vmem:[%s3954_s14 + $0xc4] ss:$16 sps:$4 sm:$0xff]  }
 0x1b2   :  { %1166 = vmatpush1.bf16.msra.mxu1 %v2720_v31  ;;  %v2780_v31 = vld [vmem:[%s3954_s14 + $0xc0] ss:$16 sps:$4 sm:$0xff]  }
 0x1b3   :  { %1167 = vmatprep.subr.bf16.mxu1 %v2725_v32  ;;  %v2788_v32 = vld [vmem:[%s3954_s14 + $0xe4] ss:$16 sps:$4 sm:$0xff]  }
 0x1b6   :  { %1168 = vmatpush1.bf16.msra.mxu1 %v2723_v33  ;;  %v2786_v33 = vld [vmem:[%s3954_s14 + $0xe0] ss:$16 sps:$4 sm:$0xff]  }
 0x1b7   :  { %1169 = vmatprep.subr.bf16.mxu1 %v2728_v34  ;;  %v2794_v34 = vld [vmem:[%s3954_s14 + $0x104] ss:$16 sps:$4 sm:$0xff]  }
 0x1ba   :  { %1170 = vmatpush1.bf16.msra.mxu1 %v2726_v35  ;;  %v2792_v35 = vld [vmem:[%s3954_s14 + $0x100] ss:$16 sps:$4 sm:$0xff]  }
 0x1bb   :  { %1171 = vmatprep.subr.bf16.mxu1 %v2731_v36  ;;  %v2800_v36 = vld [vmem:[%s3954_s14 + $0x124] ss:$16 sps:$4 sm:$0xff]  }
 0x1be   :  { %1172 = vmatpush1.bf16.msra.mxu1 %v2729_v37  ;;  %v2798_v37 = vld [vmem:[%s3954_s14 + $0x120] ss:$16 sps:$4 sm:$0xff]  }
 0x1bf   :  { %1173 = vmatprep.subr.bf16.mxu1 %v2734_v9  ;;  %v2747_v9 = vld [vmem:[%s3954_s14 + $0x8] ss:$16 sps:$4 sm:$0xff]  }
 0x1c2   :  { %1174 = vmatpush1.bf16.msra.mxu1 %v2732_v10  ;;  %v2755_v10 = vld [vmem:[%s3954_s14 + $0x2c] ss:$16 sps:$4 sm:$0xff]  }
 0x1c3   :  { %1175 = vmatprep.subr.bf16.mxu1 %v2737_v11  ;;  %v2753_v11 = vld [vmem:[%s3954_s14 + $0x28] ss:$16 sps:$4 sm:$0xff]  }
 0x1c6   :  { %1176 = vmatpush1.bf16.msra.mxu1 %v2735_v12  ;;  %v2761_v12 = vld [vmem:[%s3954_s14 + $0x4c] ss:$16 sps:$4 sm:$0xff]  }
 0x1c7   :  { %1177 = vmatprep.subr.bf16.mxu1 %v2740_v13  ;;  %v2759_v13 = vld [vmem:[%s3954_s14 + $0x48] ss:$16 sps:$4 sm:$0xff]  }
 0x1ca   :  { %1178 = vmatpush1.bf16.msra.mxu1 %v2738_v14  ;;  %v2767_v14 = vld [vmem:[%s3954_s14 + $0x6c] ss:$16 sps:$4 sm:$0xff]  }
 0x1cb   :  { %1179 = vmatprep.subr.bf16.mxu1 %v2743_v15  ;;  %v2765_v15 = vld [vmem:[%s3954_s14 + $0x68] ss:$16 sps:$4 sm:$0xff]  }
 0x1ce   :  { %1180 = vmatpush1.bf16.msra.mxu1 %v2741_v16  ;;  %v2773_v16 = vld [vmem:[%s3954_s14 + $0x8c] ss:$16 sps:$4 sm:$0xff]  }
 0x1cf   :  { %2112 = vmatprep.subr.bf16.mxu1 %v2749_v19  ;;  %v2777_v19 = vld [vmem:[%s3954_s14 + $0xa8] ss:$16 sps:$4 sm:$0xff]  }
 0x244   :  { %v2532_v38 = vpop.f32.mrb[0].mxu1 }
 0x245   :  { %v2533_v39 = vpop.f32.mrb[1].mxu1 }
 0x246   :  { %v2534_v40 = vadd.f32 %v2533_v39, %v2532_v38  ;;  %v2535_v41 = vpop.f32.mrb[2].mxu1  ;;  %v2806_v38 = vld [vmem:[%s3954_s14 + $0x144] ss:$16 sps:$4 sm:$0xff]   ;;  %v2804_v39 = vld [vmem:[%s3954_s14 + $0x140] ss:$16 sps:$4 sm:$0xff]  }
 0x247   :  { %v2536_v42 = vpop.f32.mrb[3].mxu1 }
 0x248   :  { %v2537_v43 = vadd.f32 %v2536_v42, %v2535_v41  ;;  %v676_v47 = vadd.f32 %v2534_v40, %v2304_v44  ;;  %v2812_v40 = vld [vmem:[%s3954_s14 + $0x164] ss:$16 sps:$4 sm:$0xff]   ;;  %v2810_v41 = vld [vmem:[%s3954_s14 + $0x160] ss:$16 sps:$4 sm:$0xff]  }
 0x249   :  { %v2818_v42 = vld [vmem:[%s3954_s14 + $0x184] ss:$16 sps:$4 sm:$0xff]  }
 0x24a   :  { %v679_v54 = vadd.f32 %v2537_v43, %v2304_v44  ;;  %v2816_v43 = vld [vmem:[%s3954_s14 + $0x180] ss:$16 sps:$4 sm:$0xff]   ;;  %v2824_v44 = vld [vmem:[%s3954_s14 + $0x1a4] ss:$16 sps:$4 sm:$0xff]  }
 0x264   :  { %v2554_v45 = vpop.f32.mrb[4].mxu1 }
 0x265   :  { %v2555_v46 = vpop.f32.mrb[5].mxu1 }
 0x266   :  { %v2556_v48 = vadd.f32 %v2555_v46, %v2554_v45  ;;  %v2557_v50 = vpop.f32.mrb[6].mxu1  ;;  %v2822_v45 = vld [vmem:[%s3954_s14 + $0x1a0] ss:$16 sps:$4 sm:$0xff]  }
 0x267   :  { %v2558_v53 = vpop.f32.mrb[7].mxu1 }
 0x268   :  { %v717_v56 = vadd.f32 %v2556_v48, %v676_v47  ;;  %v2559_v57 = vadd.f32 %v2558_v53, %v2557_v50  ;;  %v2338_v47 = vld [vmem:[%s3955_s9] ss:$0 sm:$0xff] }
 0x269   :  { %v2355_v53 = vld [vmem:[%s3956_s10] ss:$0 sm:$0xff] }
 0x26a   :  { %vm723_vm5 = vcmp.gt.f32.partialorder %v717_v56, 0.0  ;;  %v732_v58 = vmul.f32 %v2337_v51, %v717_v56  ;;  %v720_v59 = vadd.f32 %v2559_v57, %v679_v54 }
 0x26c   :  { %v734_v60 = vsel %vm723_vm5, %v717_v56, %v732_v58  ;;  %vm724_vm6 = vcmp.gt.f32.partialorder %v720_v59, 0.0  ;;  %v733_v61 = vmul.f32 %v2337_v51, %v720_v59 }
 0x26d   :  { %736 = vst [vmem:[%s3953_s18] sm:$0xff] %v734_v60  ;;  %v738_v63 = vrot.slane %v734_v60, 7 }
 0x26e   :  { %v735_v62 = vsel %vm724_vm6, %v720_v59, %v733_v61 }
 0x26f   :  { %737 = vst [vmem:[%s3953_s18 + $0x8] sm:$0xff] %v735_v62  ;;  %v739_v0 = vrot.slane %v735_v62, 7  ;;  %v744_v1 = vpack.c.bf16 %v735_v62, %v734_v60 }
 0x271   :  { %v740_v3 = vsel %vm70_vm0, %v738_v63, %v739_v0  ;;  %v741_v5 = vsel %vm70_vm0, %v739_v0, %v738_v63 }
 0x272   :  { %v742_v6 = vmul.f32 %v741_v5, %v3191_v52  ;;  %v743_v7 = vmul.f32 %v740_v3, %v3197_v55 }
 0x274   :  { %v745_v8 = vpack.c.bf16 %v743_v7, %v742_v6 }
 0x276   :  { %913 = vmatprep.mubr.bf16.mxu0 %v745_v8 }
 0x277   :  { %914 = vmatmul.mubr.bf16.vlgmr.msra.gmra.mrb[4].mxu0 %v744_v1 }
 0x278   :  { %2027 = vmatpush1.bf16.msra.mxu0 %v2744_v17  ;;  %v2771_v17 = vld [vmem:[%s3954_s14 + $0x88] ss:$16 sps:$4 sm:$0xff]  }
 0x279   :  { %2028 = vmatprep.subr.bf16.mxu0 %v2752_v20  ;;  %v2785_v20 = vld [vmem:[%s3954_s14 + $0xcc] ss:$16 sps:$4 sm:$0xff]  }
 0x27c   :  { %2029 = vmatpush1.bf16.msra.mxu0 %v2750_v21  ;;  %v2783_v21 = vld [vmem:[%s3954_s14 + $0xc8] ss:$16 sps:$4 sm:$0xff]  }
 0x27d   :  { %2030 = vmatprep.subr.bf16.mxu0 %v2758_v22  ;;  %v2791_v22 = vld [vmem:[%s3954_s14 + $0xec] ss:$16 sps:$4 sm:$0xff]  }
 0x280   :  { %2031 = vmatpush1.bf16.msra.mxu0 %v2756_v23  ;;  %v2789_v23 = vld [vmem:[%s3954_s14 + $0xe8] ss:$16 sps:$4 sm:$0xff]  }
 0x281   :  { %2032 = vmatprep.subr.bf16.mxu0 %v2764_v24  ;;  %v2797_v24 = vld [vmem:[%s3954_s14 + $0x10c] ss:$16 sps:$4 sm:$0xff]  }
 0x284   :  { %2033 = vmatpush1.bf16.msra.mxu0 %v2762_v25  ;;  %v2795_v25 = vld [vmem:[%s3954_s14 + $0x108] ss:$16 sps:$4 sm:$0xff]  }
 0x285   :  { %2034 = vmatprep.subr.bf16.mxu0 %v2770_v26  ;;  %v2803_v26 = vld [vmem:[%s3954_s14 + $0x12c] ss:$16 sps:$4 sm:$0xff]  }
 0x288   :  { %2035 = vmatpush1.bf16.msra.mxu0 %v2768_v27  ;;  %v2801_v27 = vld [vmem:[%s3954_s14 + $0x128] ss:$16 sps:$4 sm:$0xff]  }
 0x289   :  { %2036 = vmatprep.subr.bf16.mxu0 %v2776_v28  ;;  %v2809_v28 = vld [vmem:[%s3954_s14 + $0x14c] ss:$16 sps:$4 sm:$0xff]  }
 0x28c   :  { %2037 = vmatpush1.bf16.msra.mxu0 %v2774_v29  ;;  %v2807_v29 = vld [vmem:[%s3954_s14 + $0x148] ss:$16 sps:$4 sm:$0xff]  }
 0x28d   :  { %2038 = vmatprep.subr.bf16.mxu0 %v2782_v30  ;;  %v2815_v30 = vld [vmem:[%s3954_s14 + $0x16c] ss:$16 sps:$4 sm:$0xff]  }
 0x290   :  { %2039 = vmatpush1.bf16.msra.mxu0 %v2780_v31  ;;  %v2813_v31 = vld [vmem:[%s3954_s14 + $0x168] ss:$16 sps:$4 sm:$0xff]  }
 0x291   :  { %2040 = vmatprep.subr.bf16.mxu0 %v2788_v32  ;;  %v2821_v32 = vld [vmem:[%s3954_s14 + $0x18c] ss:$16 sps:$4 sm:$0xff]  }
 0x294   :  { %2041 = vmatpush1.bf16.msra.mxu0 %v2786_v33  ;;  %v2819_v33 = vld [vmem:[%s3954_s14 + $0x188] ss:$16 sps:$4 sm:$0xff]  }
 0x295   :  { %2042 = vmatprep.subr.bf16.mxu0 %v2794_v34  ;;  %v2827_v34 = vld [vmem:[%s3954_s14 + $0x1ac] ss:$16 sps:$4 sm:$0xff]  }
 0x298   :  { %2043 = vmatpush1.bf16.msra.mxu0 %v2792_v35  ;;  %v2825_v35 = vld [vmem:[%s3954_s14 + $0x1a8] ss:$16 sps:$4 sm:$0xff]  }
 0x299   :  { %2044 = vmatprep.subr.bf16.mxu0 %v2800_v36  ;;  %v2830_v36 = vld [vmem:[%s3954_s14 + $0x1c4] ss:$16 sps:$4 sm:$0xff]  }
 0x29c   :  { %2045 = vmatpush1.bf16.msra.mxu0 %v2798_v37  ;;  %v2833_v37 = vld [vmem:[%s3954_s14 + $0x1cc] ss:$16 sps:$4 sm:$0xff]  }
 0x29d   :  { %2046 = vmatprep.subr.bf16.mxu0 %v2806_v38  ;;  %v2828_v38 = vld [vmem:[%s3954_s14 + $0x1c0] ss:$16 sps:$4 sm:$0xff]  }
 0x2a0   :  { %2047 = vmatpush1.bf16.msra.mxu0 %v2804_v39  ;;  %v2831_v39 = vld [vmem:[%s3954_s14 + $0x1c8] ss:$16 sps:$4 sm:$0xff]  }
 0x2a1   :  { %2048 = vmatprep.subr.bf16.mxu0 %v2812_v40  ;;  %v2836_v40 = vld [vmem:[%s3954_s14 + $0x1e4] ss:$16 sps:$4 sm:$0xff]  }
 0x2a4   :  { %2049 = vmatpush1.bf16.msra.mxu0 %v2810_v41  ;;  %v2839_v41 = vld [vmem:[%s3954_s14 + $0x1ec] ss:$16 sps:$4 sm:$0xff]  }
 0x2a5   :  { %2050 = vmatprep.subr.bf16.mxu0 %v2818_v42  ;;  %v2834_v42 = vld [vmem:[%s3954_s14 + $0x1e0] ss:$16 sps:$4 sm:$0xff]  }
 0x2a8   :  { %2051 = vmatpush1.bf16.msra.mxu0 %v2816_v43  ;;  %v2837_v43 = vld [vmem:[%s3954_s14 + $0x1e8] ss:$16 sps:$4 sm:$0xff]  }
 0x2a9   :  { %2052 = vmatprep.subr.bf16.mxu0 %v2824_v44  ;;  %v2842_v44 = vld [vmem:[%s3954_s14 + $0x204] ss:$16 sps:$4 sm:$0xff]  }
 0x2ac   :  { %2053 = vmatpush1.bf16.msra.mxu0 %v2822_v45  ;;  %v2845_v45 = vld [vmem:[%s3954_s14 + $0x20c] ss:$16 sps:$4 sm:$0xff]  }
 0x2ad   :  { %2054 = vmatprep.subr.bf16.mxu0 %v2830_v36  ;;  %v2861_v36 = vld [vmem:[%s3954_s14 + $0x268] ss:$16 sps:$4 sm:$0xff]  }
 0x2b0   :  { %2055 = vmatpush1.bf16.msra.mxu0 %v2828_v38  ;;  %v2869_v38 = vld [vmem:[%s3954_s14 + $0x28c] ss:$16 sps:$4 sm:$0xff]  }
 0x2b1   :  { %2056 = vmatprep.subr.bf16.mxu0 %v2836_v40  ;;  %v2867_v40 = vld [vmem:[%s3954_s14 + $0x288] ss:$16 sps:$4 sm:$0xff]  }
 0x2b4   :  { %2057 = vmatpush1.bf16.msra.mxu0 %v2834_v42  ;;  %v2875_v42 = vld [vmem:[%s3954_s14 + $0x2ac] ss:$16 sps:$4 sm:$0xff]  }
 0x2b5   :  { %2069 = vmatprep.subr.bf16.mxu0 %v2842_v44  ;;  %v2873_v44 = vld [vmem:[%s3954_s14 + $0x2a8] ss:$16 sps:$4 sm:$0xff]  }
 0x34a   :  { %v2576_v46 = vpop.f32.mrb[4].mxu0 }
 0x34b   :  { %v2577_v48 = vpop.f32.mrb[5].mxu0 }
 0x34c   :  { %v2578_v50 = vadd.f32 %v2577_v48, %v2576_v46  ;;  %v2579_v51 = vpop.f32.mrb[6].mxu0  ;;  %v977_v46 = vld [vmem:[%s3958_s12] sm:$0x3] }
 0x34d   :  { %v2580_v54 = vpop.f32.mrb[7].mxu0  ;;  %v982_v48 = vrot.slane %v977_v46, %v3220_v2 }
 0x34e   :  { %v916_v56 = vadd.f32 %v2578_v50, %v2338_v47  ;;  %v2581_v57 = vadd.f32 %v2580_v54, %v2579_v51  ;;  %v986_v50 = vrot.slane %v977_v46, %v3226_v4  ;;  %v2881_v46 = vld [vmem:[%s3954_s14 + $0x2cc] ss:$16 sps:$4 sm:$0xff]  }
 0x350   :  { %vm922_vm7 = vcmp.gt.f32.partialorder %v916_v56, 0.0  ;;  %v931_v58 = vmul.f32 %v2355_v53, %v916_v56  ;;  %v919_v59 = vadd.f32 %v2581_v57, %v2338_v47  ;;  %v1196_v47 = vld [vmem:[%s3959_s13] sm:$0x3] }
 0x351   :  { %v1201_v51 = vrot.slane %v1196_v47, %v3220_v2  ;;  %v1205_v54 = vrot.slane %v1196_v47, %v3226_v4  ;;  %v2876_v47 = vld [vmem:[%s3954_s14 + $0x2c0] ss:$16 sps:$4 sm:$0xff]  }
 0x352   :  { %v933_v60 = vsel %vm922_vm7, %v916_v56, %v931_v58  ;;  %vm923_vm8 = vcmp.gt.f32.partialorder %v919_v59, 0.0  ;;  %v932_v61 = vmul.f32 %v2355_v53, %v919_v59 }
 0x353   :  { %935 = vst [vmem:[%s3957_s19] sm:$0xff] %v933_v60  ;;  %v937_v63 = vrot.slane %v933_v60, 7 }
 0x354   :  { %v934_v62 = vsel %vm923_vm8, %v919_v59, %v932_v61 }
 0x355   :  { %936 = vst [vmem:[%s3957_s19 + $0x8] sm:$0xff] %v934_v62  ;;  %v938_v0 = vrot.slane %v934_v62, 7  ;;  %v943_v1 = vpack.c.bf16 %v934_v62, %v933_v60 }
 0x357   :  { %v939_v3 = vsel %vm70_vm0, %v937_v63, %v938_v0  ;;  %v940_v5 = vsel %vm70_vm0, %v938_v0, %v937_v63 }
 0x358   :  { %v941_v6 = vmul.f32 %v940_v5, %v3191_v52  ;;  %v942_v7 = vmul.f32 %v939_v3, %v3197_v55 }
 0x35a   :  { %v944_v8 = vpack.c.bf16 %v942_v7, %v941_v6 }
 0x35c   :  { %1181 = vmatprep.mubr.bf16.mxu1 %v944_v8 }
 0x35d   :  { %1182 = vmatmul.mubr.bf16.vlgmr.msra.gmra.mrb[8].mxu1 %v943_v1 }
 0x35e   :  { %2113 = vmatpush1.bf16.msra.mxu1 %v2747_v9 }
 0x35f   :  { %2114 = vmatprep.subr.bf16.mxu1 %v2755_v10 }
 0x362   :  { %2115 = vmatpush1.bf16.msra.mxu1 %v2753_v11 }
 0x363   :  { %2116 = vmatprep.subr.bf16.mxu1 %v2761_v12 }
 0x366   :  { %2117 = vmatpush1.bf16.msra.mxu1 %v2759_v13 }
 0x367   :  { %2118 = vmatprep.subr.bf16.mxu1 %v2767_v14 }
 0x36a   :  { %2119 = vmatpush1.bf16.msra.mxu1 %v2765_v15  ;;  %v2840_v15 = vld [vmem:[%s3954_s14 + $0x200] ss:$16 sps:$4 sm:$0xff]  }
 0x36b   :  { %2120 = vmatprep.subr.bf16.mxu1 %v2773_v16  ;;  %v2843_v16 = vld [vmem:[%s3954_s14 + $0x208] ss:$16 sps:$4 sm:$0xff]  }
 0x36e   :  { %2121 = vmatpush1.bf16.msra.mxu1 %v2771_v17  ;;  %v2848_v17 = vld [vmem:[%s3954_s14 + $0x224] ss:$16 sps:$4 sm:$0xff]  }
 0x36f   :  { %2122 = vmatprep.subr.bf16.mxu1 %v2779_v18  ;;  %v2851_v18 = vld [vmem:[%s3954_s14 + $0x22c] ss:$16 sps:$4 sm:$0xff]  }
 0x372   :  { %2123 = vmatpush1.bf16.msra.mxu1 %v2777_v19 }
 0x373   :  { %2124 = vmatprep.subr.bf16.mxu1 %v2785_v20 }
 0x376   :  { %2125 = vmatpush1.bf16.msra.mxu1 %v2783_v21 }
 0x377   :  { %2126 = vmatprep.subr.bf16.mxu1 %v2791_v22 }
 0x37a   :  { %2127 = vmatpush1.bf16.msra.mxu1 %v2789_v23 }
 0x37b   :  { %2128 = vmatprep.subr.bf16.mxu1 %v2797_v24 }
 0x37e   :  { %2129 = vmatpush1.bf16.msra.mxu1 %v2795_v25 }
 0x37f   :  { %2130 = vmatprep.subr.bf16.mxu1 %v2803_v26 }
 0x382   :  { %2131 = vmatpush1.bf16.msra.mxu1 %v2801_v27  ;;  %v2846_v27 = vld [vmem:[%s3954_s14 + $0x220] ss:$16 sps:$4 sm:$0xff]  }
 0x383   :  { %2132 = vmatprep.subr.bf16.mxu1 %v2809_v28  ;;  %v2849_v28 = vld [vmem:[%s3954_s14 + $0x228] ss:$16 sps:$4 sm:$0xff]  }
 0x386   :  { %2133 = vmatpush1.bf16.msra.mxu1 %v2807_v29 }
 0x387   :  { %2134 = vmatprep.subr.bf16.mxu1 %v2815_v30 }
 0x38a   :  { %2135 = vmatpush1.bf16.msra.mxu1 %v2813_v31  ;;  %v2852_v31 = vld [vmem:[%s3954_s14 + $0x240] ss:$16 sps:$4 sm:$0xff]  }
 0x38b   :  { %2136 = vmatprep.subr.bf16.mxu1 %v2821_v32  ;;  %v2855_v32 = vld [vmem:[%s3954_s14 + $0x248] ss:$16 sps:$4 sm:$0xff]  }
 0x38e   :  { %2137 = vmatpush1.bf16.msra.mxu1 %v2819_v33  ;;  %v2860_v33 = vld [vmem:[%s3954_s14 + $0x264] ss:$16 sps:$4 sm:$0xff]  }
 0x38f   :  { %2138 = vmatprep.subr.bf16.mxu1 %v2827_v34  ;;  %v2863_v34 = vld [vmem:[%s3954_s14 + $0x26c] ss:$16 sps:$4 sm:$0xff]  }
 0x392   :  { %2139 = vmatpush1.bf16.msra.mxu1 %v2825_v35  ;;  %v2858_v35 = vld [vmem:[%s3954_s14 + $0x260] ss:$16 sps:$4 sm:$0xff]  }
 0x393   :  { %2140 = vmatprep.subr.bf16.mxu1 %v2833_v37  ;;  %v2866_v37 = vld [vmem:[%s3954_s14 + $0x284] ss:$16 sps:$4 sm:$0xff]  }
 0x396   :  { %2141 = vmatpush1.bf16.msra.mxu1 %v2831_v39  ;;  %v2864_v39 = vld [vmem:[%s3954_s14 + $0x280] ss:$16 sps:$4 sm:$0xff]  }
 0x397   :  { %2142 = vmatprep.subr.bf16.mxu1 %v2839_v41  ;;  %v2872_v41 = vld [vmem:[%s3954_s14 + $0x2a4] ss:$16 sps:$4 sm:$0xff]  }
 0x39a   :  { %2143 = vmatpush1.bf16.msra.mxu1 %v2837_v43  ;;  %v2870_v43 = vld [vmem:[%s3954_s14 + $0x2a0] ss:$16 sps:$4 sm:$0xff]  }
 0x39b   :  { %2155 = vmatprep.subr.bf16.mxu1 %v2845_v45  ;;  %v2878_v45 = vld [vmem:[%s3954_s14 + $0x2c4] ss:$16 sps:$4 sm:$0xff]  }
 0x430   :  { %v1183_v53 = vpop.f32.mrb[8].mxu1 }
 0x431   :  { %v1184_v56 = vadd.f32 %v1183_v53, %v982_v48  ;;  %v1185_v57 = vpop.f32.mrb[9].mxu1  ;;  %v2882_v53 = vld [vmem:[%s3954_s14 + $0x2e0] ss:$16 sps:$4 sm:$0xff]  }
 0x432   :  { %v1186_v58 = vadd.f32 %v1185_v57, %v986_v50  ;;  %v1187_v59 = vpop.f32.mrb[10].mxu1  ;;  %v2893_v57 = vld [vmem:[%s3954_s14 + $0x30c] ss:$16 sps:$4 sm:$0xff]  }
 0x433   :  { %vm1192_vm9 = vcmp.gt.f32.partialorder %v1184_v56, 0.0  ;;  %v1208_v60 = vmul.f32 %v1201_v51, %v1184_v56  ;;  %v1188_v61 = vadd.f32 %v1187_v59, %v982_v48  ;;  %v1189_v62 = vpop.f32.mrb[11].mxu1  ;;  %v2879_v48 = vld [vmem:[%s3954_s14 + $0x2c8] ss:$16 sps:$4 sm:$0xff]  }
 0x434   :  { %vm1193_vm10 = vcmp.gt.f32.partialorder %v1186_v58, 0.0  ;;  %v1209_v63 = vmul.f32 %v1205_v54, %v1186_v58  ;;  %v1190_v0 = vadd.f32 %v1189_v62, %v986_v50  ;;  %v2884_v50 = vld [vmem:[%s3954_s14 + $0x2e4] ss:$16 sps:$4 sm:$0xff]   ;;  %v2891_v59 = vld [vmem:[%s3954_s14 + $0x308] ss:$16 sps:$4 sm:$0xff]  }
 0x435   :  { %v1212_v1 = vsel %vm1192_vm9, %v1184_v56, %v1208_v60  ;;  %vm1194_vm11 = vcmp.gt.f32.partialorder %v1188_v61, 0.0  ;;  %v1210_v3 = vmul.f32 %v1201_v51, %v1188_v61  ;;  %v2887_v51 = vld [vmem:[%s3954_s14 + $0x2ec] ss:$16 sps:$4 sm:$0xff]   ;;  %v2890_v56 = vld [vmem:[%s3954_s14 + $0x304] ss:$16 sps:$4 sm:$0xff]  }
 0x436   :  { %1216 = vst [vmem:[%s3960_s20] sm:$0xff] %v1212_v1  ;;  %v1213_v5 = vsel %vm1193_vm10, %v1186_v58, %v1209_v63  ;;  %vm1195_vm12 = vcmp.gt.f32.partialorder %v1190_v0, 0.0  ;;  %v1211_v6 = vmul.f32 %v1205_v54, %v1190_v0  ;;  %v1220_v8 = vrot.slane %v1212_v1, 7  ;;  %v2885_v54 = vld [vmem:[%s3954_s14 + $0x2e8] ss:$16 sps:$4 sm:$0xff]   ;;  %v2888_v58 = vld [vmem:[%s3954_s14 + $0x300] ss:$16 sps:$4 sm:$0xff]  }
 0x437   :  { %1217 = vst [vmem:[%s3960_s20 + $0x8] sm:$0xff] %v1213_v5  ;;  %v1214_v7 = vsel %vm1194_vm11, %v1188_v61, %v1210_v3  ;;  %v1221_v12 = vrot.slane %v1213_v5, 7  ;;  %v2896_v60 = vld [vmem:[%s3954_s14 + $0x324] ss:$16 sps:$4 sm:$0xff]   ;;  %v2899_v61 = vld [vmem:[%s3954_s14 + $0x32c] ss:$16 sps:$4 sm:$0xff]  }
 0x438   :  { %1218 = vst [vmem:[%s3960_s20 + $0x10] sm:$0xff] %v1214_v7  ;;  %v1222_v9 = vrot.slane %v1214_v7, 7  ;;  %v1232_v10 = vpack.c.bf16 %v1214_v7, %v1212_v1  ;;  %v1215_v11 = vsel %vm1195_vm12, %v1190_v0, %v1211_v6  ;;  %v2894_v62 = vld [vmem:[%s3954_s14 + $0x320] ss:$16 sps:$4 sm:$0xff]   ;;  %v2897_v63 = vld [vmem:[%s3954_s14 + $0x328] ss:$16 sps:$4 sm:$0xff]  }
 0x439   :  { %1219 = vst [vmem:[%s3960_s20 + $0x18] sm:$0xff] %v1215_v11  ;;  %v1223_v13 = vrot.slane %v1215_v11, 7  ;;  %v1233_v14 = vpack.c.bf16 %v1215_v11, %v1213_v5  ;;  %v2902_v0 = vld [vmem:[%s3954_s14 + $0x344] ss:$16 sps:$4 sm:$0xff]   ;;  %v2905_v1 = vld [vmem:[%s3954_s14 + $0x34c] ss:$16 sps:$4 sm:$0xff]  }
 0x43a   :  { %v1224_v19 = vsel %vm70_vm0, %v1220_v8, %v1222_v9  ;;  %v1226_v20 = vsel %vm70_vm0, %v1222_v9, %v1220_v8  ;;  %v2900_v3 = vld [vmem:[%s3954_s14 + $0x340] ss:$16 sps:$4 sm:$0xff]   ;;  %v2903_v5 = vld [vmem:[%s3954_s14 + $0x348] ss:$16 sps:$4 sm:$0xff]   ;;  %v2908_v6 = vld [vmem:[%s3954_s14 + $0x364] ss:$16 sps:$4 sm:$0xff]  }
 0x43b   :  { %2058 = vmatprep.mubr.bf16.mxu0 %v1233_v14  ;;  %2144 = vmatprep.mubr.bf16.mxu1 %v1233_v14  ;;  %v1225_v21 = vsel %vm70_vm0, %v1221_v12, %v1223_v13  ;;  %v1227_v22 = vsel %vm70_vm0, %v1223_v13, %v1221_v12  ;;  %v1228_v23 = vmul.f32 %v1226_v20, %v3191_v52  ;;  %v2911_v7 = vld [vmem:[%s3954_s14 + $0x36c] ss:$16 sps:$4 sm:$0xff]   ;;  %v2906_v8 = vld [vmem:[%s3954_s14 + $0x360] ss:$16 sps:$4 sm:$0xff]   ;;  %v2909_v9 = vld [vmem:[%s3954_s14 + $0x368] ss:$16 sps:$4 sm:$0xff]  }
 0x43c   :  { %2059 = vmatmul.mubr.bf16.vlgmr.msra.gmra.mrb[8].mxu0 %v1232_v10  ;;  %2145 = vmatmul.mubr.bf16.vlgmr.msra.gmra.mrb[12].mxu1 %v1232_v10  ;;  %v1229_v24 = vmul.f32 %v1227_v22, %v3191_v52  ;;  %v1231_v25 = vmul.f32 %v1225_v21, %v3197_v55  ;;  %v1230_v26 = vmul.f32 %v1224_v19, %v3197_v55  ;;  %v2854_v52 = vld [vmem:[%s3954_s14 + $0x244] ss:$16 sps:$4 sm:$0xff]   ;;  %v2857_v55 = vld [vmem:[%s3954_s14 + $0x24c] ss:$16 sps:$4 sm:$0xff]   ;;  %v2912_v12 = vld [vmem:[%s3954_s14 + $0x380] ss:$16 sps:$4 sm:$0xff]  }
 0x43d   :  { %2070 = vmatpush1.bf16.msra.mxu0 %v2840_v15  ;;  %2156 = vmatpush1.bf16.msra.mxu1 %v2843_v16  ;;  %v2914_v10 = vld [vmem:[%s3954_s14 + $0x384] ss:$16 sps:$4 sm:$0xff]   ;;  %v2917_v11 = vld [vmem:[%s3954_s14 + $0x38c] ss:$16 sps:$4 sm:$0xff]   ;;  %v2915_v13 = vld [vmem:[%s3954_s14 + $0x388] ss:$16 sps:$4 sm:$0xff]  }
 0x43e   :  { %2071 = vmatprep.subr.bf16.mxu0 %v2848_v17  ;;  %2157 = vmatprep.subr.bf16.mxu1 %v2851_v18  ;;  %v1235_v29 = vpack.c.bf16 %v1231_v25, %v1229_v24  ;;  %v3740_v30 = vpack.c.bf16 %v1230_v26, %v1228_v23  ;;  %v2920_v14 = vld [vmem:[%s3954_s14 + $0x3a4] ss:$16 sps:$4 sm:$0xff]   ;;  %v2923_v15 = vld [vmem:[%s3954_s14 + $0x3ac] ss:$16 sps:$4 sm:$0xff]   ;;  %v2918_v16 = vld [vmem:[%s3954_s14 + $0x3a0] ss:$16 sps:$4 sm:$0xff]  }
 0x43f   :  { %v2921_v17 = vld [vmem:[%s3954_s14 + $0x3a8] ss:$16 sps:$4 sm:$0xff]   ;;  %v2926_v18 = vld [vmem:[%s3954_s14 + $0x3c4] ss:$16 sps:$4 sm:$0xff]   ;;  %v2929_v19 = vld [vmem:[%s3954_s14 + $0x3cc] ss:$16 sps:$4 sm:$0xff]  }
 0x440   :  { %2101 = vmatprep.mubr.bf16.mxu0 %v1235_v29  ;;  %2187 = vmatprep.mubr.bf16.mxu1 %v1235_v29  ;;  %v2924_v20 = vld [vmem:[%s3954_s14 + $0x3c0] ss:$16 sps:$4 sm:$0xff]   ;;  %v2927_v21 = vld [vmem:[%s3954_s14 + $0x3c8] ss:$16 sps:$4 sm:$0xff]   ;;  %v2932_v22 = vld [vmem:[%s3954_s14 + $0x3e4] ss:$16 sps:$4 sm:$0xff]  }
 0x441   :  { %2072 = vmatpush1.bf16.msra.mxu0 %v2846_v27  ;;  %2158 = vmatpush1.bf16.msra.mxu1 %v2849_v28  ;;  %v2935_v23 = vld [vmem:[%s3954_s14 + $0x3ec] ss:$16 sps:$4 sm:$0xff]   ;;  %v2930_v24 = vld [vmem:[%s3954_s14 + $0x3e0] ss:$16 sps:$4 sm:$0xff]   ;;  %v2933_v25 = vld [vmem:[%s3954_s14 + $0x3e8] ss:$16 sps:$4 sm:$0xff]  }
 0x442   :  { %2073 = vmatprep.subr.bf16.mxu0 %v2854_v52  ;;  %2159 = vmatprep.subr.bf16.mxu1 %v2857_v55  ;;  %v1376_v26 = vsub.s32 2, %v3188_v49  ;;  %v1364_v27 = vld [vmem:[%s3961_s15] sm:$0xf]  ;;  %v1380_v28 = vsub.s32 3, %v3188_v49 }
 0x443   :  { %v2206_v29 = vld [vmem:[%s3962_s16] sm:$0xf]  ;;  %v1369_v52 = vrot.slane %v1364_v27, %v3220_v2 }
 0x444   :  { %v1377_v55 = vrot.slane %v1364_v27, %v1376_v26 }
 0x445   :  { %2074 = vmatpush1.bf16.msra.mxu0 %v2852_v31  ;;  %2160 = vmatpush1.bf16.msra.mxu1 %v2855_v32  ;;  %v1373_v31 = vrot.slane %v1364_v27, %v3226_v4  ;;  %v1381_v32 = vrot.slane %v1364_v27, %v1380_v28 }
 0x446   :  { %2075 = vmatprep.subr.bf16.mxu0 %v2860_v33  ;;  %2161 = vmatprep.subr.bf16.mxu1 %v2863_v34  ;;  %v2219_v33 = vrot.slane %v2206_v29, %v1376_v26 }
 0x449   :  { %2076 = vmatpush1.bf16.msra.mxu0 %v2858_v35  ;;  %2162 = vmatpush1.bf16.msra.mxu1 %v2861_v36  ;;  %v2215_v36 = vrot.slane %v2206_v29, %v3226_v4 }
 0x44a   :  { %2077 = vmatprep.subr.bf16.mxu0 %v2866_v37  ;;  %2163 = vmatprep.subr.bf16.mxu1 %v2869_v38  ;;  %v2223_v37 = vrot.slane %v2206_v29, %v1380_v28 }
 0x44d   :  { %2078 = vmatpush1.bf16.msra.mxu0 %v2864_v39  ;;  %2164 = vmatpush1.bf16.msra.mxu1 %v2867_v40 }
 0x44e   :  { %2079 = vmatprep.subr.bf16.mxu0 %v2872_v41  ;;  %2165 = vmatprep.subr.bf16.mxu1 %v2875_v42 }
 0x451   :  { %2080 = vmatpush1.bf16.msra.mxu0 %v2870_v43  ;;  %2166 = vmatpush1.bf16.msra.mxu1 %v2873_v44 }
 0x452   :  { %2081 = vmatprep.subr.bf16.mxu0 %v2878_v45  ;;  %2167 = vmatprep.subr.bf16.mxu1 %v2881_v46 }
 0x455   :  { %2082 = vmatpush1.bf16.msra.mxu0 %v2876_v47  ;;  %2168 = vmatpush1.bf16.msra.mxu1 %v2879_v48 }
 0x456   :  { %2083 = vmatprep.subr.bf16.mxu0 %v2884_v50  ;;  %2169 = vmatprep.subr.bf16.mxu1 %v2887_v51 }
 0x459   :  { %2084 = vmatpush1.bf16.msra.mxu0 %v2882_v53  ;;  %2170 = vmatpush1.bf16.msra.mxu1 %v2885_v54 }
 0x45a   :  { %2085 = vmatprep.subr.bf16.mxu0 %v2890_v56  ;;  %2171 = vmatprep.subr.bf16.mxu1 %v2893_v57 }
 0x45d   :  { %2086 = vmatpush1.bf16.msra.mxu0 %v2888_v58  ;;  %2172 = vmatpush1.bf16.msra.mxu1 %v2891_v59 }
 0x45e   :  { %2087 = vmatprep.subr.bf16.mxu0 %v2896_v60  ;;  %2173 = vmatprep.subr.bf16.mxu1 %v2899_v61 }
 0x461   :  { %2088 = vmatpush1.bf16.msra.mxu0 %v2894_v62  ;;  %2174 = vmatpush1.bf16.msra.mxu1 %v2897_v63 }
 0x462   :  { %2089 = vmatprep.subr.bf16.mxu0 %v2902_v0  ;;  %2175 = vmatprep.subr.bf16.mxu1 %v2905_v1 }
 0x465   :  { %2090 = vmatpush1.bf16.msra.mxu0 %v2900_v3  ;;  %2176 = vmatpush1.bf16.msra.mxu1 %v2903_v5 }
 0x466   :  { %2091 = vmatprep.subr.bf16.mxu0 %v2908_v6  ;;  %2177 = vmatprep.subr.bf16.mxu1 %v2911_v7 }
 0x469   :  { %2092 = vmatpush1.bf16.msra.mxu0 %v2906_v8  ;;  %2178 = vmatpush1.bf16.msra.mxu1 %v2909_v9 }
 0x46a   :  { %2093 = vmatprep.subr.bf16.mxu0 %v2914_v10  ;;  %2179 = vmatprep.subr.bf16.mxu1 %v2917_v11 }
 0x46d   :  { %2094 = vmatpush1.bf16.msra.mxu0 %v2912_v12  ;;  %2180 = vmatpush1.bf16.msra.mxu1 %v2915_v13 }
 0x46e   :  { %2095 = vmatprep.subr.bf16.mxu0 %v2920_v14  ;;  %2181 = vmatprep.subr.bf16.mxu1 %v2923_v15 }
 0x471   :  { %2096 = vmatpush1.bf16.msra.mxu0 %v2918_v16  ;;  %2182 = vmatpush1.bf16.msra.mxu1 %v2921_v17 }
 0x472   :  { %2097 = vmatprep.subr.bf16.mxu0 %v2926_v18  ;;  %2183 = vmatprep.subr.bf16.mxu1 %v2929_v19 }
 0x475   :  { %2098 = vmatpush1.bf16.msra.mxu0 %v2924_v20  ;;  %2184 = vmatpush1.bf16.msra.mxu1 %v2927_v21 }
 0x476   :  { %2099 = vmatprep.subr.bf16.mxu0 %v2932_v22  ;;  %2185 = vmatprep.subr.bf16.mxu1 %v2935_v23 }
 0x479   :  { %2100 = vmatpush1.bf16.msra.mxu0 %v2930_v24  ;;  %2186 = vmatpush1.bf16.msra.mxu1 %v2933_v25 }
 0x47c   :  { %2102 = vmatmul.mubr.bf16.vlgmr.msra.gmra.mrb[8].mxu0 %v3740_v30  ;;  %2188 = vmatmul.mubr.bf16.vlgmr.msra.gmra.mrb[12].mxu1 %v3740_v30  ;;  %v2211_v30 = vrot.slane %v2206_v29, %v3220_v2 }
 0x54f   :  { %v2103_v34 = vpop.f32.mrb[8].mxu0  ;;  %v2189_v35 = vpop.f32.mrb[12].mxu1 }
 0x550   :  { %v2582_v38 = vadd.f32 %v2103_v34, %v1369_v52  ;;  %v2586_v49 = vadd.f32 %v2189_v35, %v1377_v55  ;;  %v2105_v39 = vpop.f32.mrb[9].mxu0  ;;  %v2191_v40 = vpop.f32.mrb[13].mxu1 }
 0x551   :  { %v2583_v41 = vadd.f32 %v2105_v39, %v1373_v31  ;;  %v2587_v42 = vadd.f32 %v2191_v40, %v1381_v32  ;;  %v2107_v43 = vpop.f32.mrb[10].mxu0  ;;  %v2193_v44 = vpop.f32.mrb[14].mxu1 }
 0x552   :  { %vm2198_vm13 = vcmp.gt.f32.partialorder %v2582_v38, 0.0  ;;  %v2228_v45 = vmul.f32 %v2582_v38, %v2211_v30  ;;  %vm2200_vm14 = vcmp.gt.f32.partialorder %v2586_v49, 0.0  ;;  %v2230_v46 = vmul.f32 %v2586_v49, %v2219_v33  ;;  %v2109_v47 = vpop.f32.mrb[11].mxu0  ;;  %v2195_v2 = vpop.f32.mrb[15].mxu1 }
 0x553   :  { %vm2199_vm15 = vcmp.gt.f32.partialorder %v2583_v41, 0.0  ;;  %v2229_v48 = vmul.f32 %v2583_v41, %v2215_v36  ;;  %vm2201_vm0 = vcmp.gt.f32.partialorder %v2587_v42, 0.0  ;;  %v2231_v50 = vmul.f32 %v2587_v42, %v2223_v37 }
 0x554   :  { %v2236_v4 = vsel %vm2198_vm13, %v2582_v38, %v2228_v45  ;;  %v2238_v51 = vsel %vm2200_vm14, %v2586_v49, %v2230_v46  ;;  %v2584_v53 = vadd.f32 %v2107_v43, %v1369_v52  ;;  %v2588_v54 = vadd.f32 %v2193_v44, %v1377_v55 }
 0x555   :  { %2244 = vst [vmem:[%s3963_s21] sm:$0xff] %v2236_v4  ;;  %2246 = vst [vmem:[%s3963_s21 + $0x10] sm:$0xff] %v2238_v51  ;;  %v2237_v56 = vsel %vm2199_vm15, %v2583_v41, %v2229_v48  ;;  %v2239_v57 = vsel %vm2201_vm0, %v2587_v42, %v2231_v50  ;;  %v2585_v58 = vadd.f32 %v2109_v47, %v1373_v31 }
 0x556   :  { %v2589_v59 = vadd.f32 %v2195_v2, %v1381_v32  ;;  %2245 = vst [vmem:[%s3963_s21 + $0x8] sm:$0xff] %v2237_v56  ;;  %2247 = vst [vmem:[%s3963_s21 + $0x18] sm:$0xff] %v2239_v57  ;;  %vm2202_vm1 = vcmp.gt.f32.partialorder %v2584_v53, 0.0  ;;  %v2232_v60 = vmul.f32 %v2584_v53, %v2211_v30  ;;  %vm2204_vm2 = vcmp.gt.f32.partialorder %v2588_v54, 0.0 }
 0x557   :  { %v2234_v61 = vmul.f32 %v2588_v54, %v2219_v33  ;;  %vm2203_vm3 = vcmp.gt.f32.partialorder %v2585_v58, 0.0  ;;  %v2233_v62 = vmul.f32 %v2585_v58, %v2215_v36 }
 0x558   :  { %vm2205_vm4 = vcmp.gt.f32.partialorder %v2589_v59, 0.0  ;;  %v2235_v63 = vmul.f32 %v2589_v59, %v2223_v37  ;;  %v2240_v0 = vsel %vm2202_vm1, %v2584_v53, %v2232_v60 }
 0x559   :  { %v2242_v1 = vsel %vm2204_vm2, %v2588_v54, %v2234_v61  ;;  %2248 = vst [vmem:[%s3963_s21 + $0x20] sm:$0xff] %v2240_v0  ;;  %v2241_v3 = vsel %vm2203_vm3, %v2585_v58, %v2233_v62 }
 0x55a   :  { %2250 = vst [vmem:[%s3963_s21 + $0x30] sm:$0xff] %v2242_v1  ;;  %v2243_v5 = vsel %vm2205_vm4, %v2589_v59, %v2235_v63  ;;  %2249 = vst [vmem:[%s3963_s21 + $0x28] sm:$0xff] %v2241_v3 }
 0x55b   :  { %2251 = vst [vmem:[%s3963_s21 + $0x38] sm:$0xff] %v2243_v5 }

</bundles_post_ra>
